<compile_context>
chip_gen: v7x
topology: tpu7x:2x2x1
jax: 0.10.0
libtpu: 0.0.40
codegen_flags: <defaults>
</compile_context>

<pallas_src>
import jax
import jax.numpy as jnp
from jax.experimental import pallas as pl
from jax.experimental.pallas import tpu as pltpu

LANE = 128


def _round_up(n, m):
    return ((n + m - 1) // m) * m


def mlp_kernel(x_ref, w1_ref, b1_ref, w2_ref, b2_ref, w3_ref, b3_ref,
               w4_ref, b4_ref, o_ref):
    """One batch tile: bf16 activations/weights, f32 MXU accumulation."""
    # Hidden layer 1: Linear(input_size, 512) + ReLU
    h = jnp.dot(x_ref[...], w1_ref[...], preferred_element_type=jnp.float32)
    h = jnp.maximum(h + b1_ref[...], 0.0).astype(jnp.bfloat16)
    # Hidden layer 2: Linear(512, 256) + ReLU
    h = jnp.dot(h, w2_ref[...], preferred_element_type=jnp.float32)
    h = jnp.maximum(h + b2_ref[...], 0.0).astype(jnp.bfloat16)
    # Hidden layer 3: Linear(256, 128) + ReLU
    h = jnp.dot(h, w3_ref[...], preferred_element_type=jnp.float32)
    h = jnp.maximum(h + b3_ref[...], 0.0).astype(jnp.bfloat16)
    # Classifier: Linear(128, out_padded) (no activation), lane-dense store.
    out = jnp.dot(h, w4_ref[...], preferred_element_type=jnp.float32)
    o_ref[...] = (out + b4_ref[...]).astype(o_ref.dtype)


@jax.jit
def my_model_forward(x, params):
    """x: [B, C, H, W] float32. params: bf16 weights [in,out], f32 biases [1,out],
    classifier already zero-padded to a 128-multiple output width.
    Returns [B, out_padded] float32 (caller slices the real output columns)."""
    B = x.shape[0]
    x2d = x.reshape(B, -1).astype(jnp.bfloat16)  # torch.flatten(x, start_dim=1)
    K = x2d.shape[1]

    w1, b1 = params["w1"], params["b1"]
    w2, b2 = params["w2"], params["b2"]
    w3, b3 = params["w3"], params["b3"]
    w4, b4 = params["w4"], params["b4"]
    out_pad = w4.shape[1]

    # Batch tile: full MXU-height tile when B allows, else the (8-aligned) batch.
    tm = 128 if B >= 128 else _round_up(B, 8)
    B_pad = _round_up(B, tm)
    if B_pad != B:
        x2d = jnp.pad(x2d, ((0, B_pad - B), (0, 0)))

    def _resident(shape):
        # Full-array block with a constant block index: fetched once, stays in
        # VMEM across all batch tiles (Pallas skips re-DMA on unchanged index).
        return pl.BlockSpec(shape, lambda i: (0, 0))

    out = pl.pallas_call(
        mlp_kernel,
        out_shape=jax.ShapeDtypeStruct((B_pad, out_pad), jnp.float32),
        grid=(B_pad // tm,),
        in_specs=[
            pl.BlockSpec((tm, K), lambda i: (i, 0)),   # batch-tiled activations
            _resident(w1.shape), _resident(b1.shape),
            _resident(w2.shape), _resident(b2.shape),
            _resident(w3.shape), _resident(b3.shape),
            _resident(w4.shape), _resident(b4.shape),
        ],
        out_specs=pl.BlockSpec((tm, out_pad), lambda i: (i, 0)),
        compiler_params=pltpu.CompilerParams(
            dimension_semantics=("parallel",)),        # v7x: 2 TCs share the batch
    )(x2d, w1, b1, w2, b2, w3, b3, w4, b4)

    return out[:B]


def init_params(key, input_size, output_size):
    """Deterministic init mimicking nn.Linear (uniform(-1/sqrt(fan_in), 1/sqrt(fan_in))).
    Weights stored transposed as [in, out], float32."""
    dims = [(input_size, 512), (512, 256), (256, 128), (128, output_size)]
    params = {}
    for i, (fan_in, fan_out) in enumerate(dims, start=1):
        key, kw, kb = jax.random.split(key, 3)
        bound = 1.0 / jnp.sqrt(float(fan_in))
        params[f"w{i}"] = jax.random.uniform(
            kw, (fan_in, fan_out), jnp.float32, -bound, bound)
        params[f"b{i}"] = jax.random.uniform(
            kb, (1, fan_out), jnp.float32, -bound, bound)
    return params


def prepare_params(params):
    """Kernel-ready params: bf16 weights, f32 biases, classifier zero-padded to
    a lane-dense (128-multiple) output width."""
    out_size = params["w4"].shape[1]
    out_pad = _round_up(out_size, LANE)
    prepped = {}
    for i in range(1, 5):
        w, b = params[f"w{i}"], params[f"b{i}"]
        if i == 4 and out_pad != out_size:
            w = jnp.pad(w, ((0, 0), (0, out_pad - out_size)))
            b = jnp.pad(b, ((0, 0), (0, out_pad - out_size)))
        prepped[f"w{i}"] = w.astype(jnp.bfloat16)
        prepped[f"b{i}"] = b.astype(jnp.float32)
    return prepped


def reference_forward(x, prepped):
    """Pure-JAX reference using the same bf16 weights, f32 math throughout."""
    h = x.reshape(x.shape[0], -1).astype(jnp.bfloat16).astype(jnp.float32)
    for i in range(1, 4):
        h = jnp.maximum(
            h @ prepped[f"w{i}"].astype(jnp.float32) + prepped[f"b{i}"], 0.0)
    return h @ prepped["w4"].astype(jnp.float32) + prepped["b4"]


if __name__ == "__main__":
    key = jax.random.PRNGKey(0)
    k_x, k_p = jax.random.split(key)

    B, C, H, W = 256, 4, 8, 8          # input_size = C*H*W = 256; grid = (2,)
    input_size = C * H * W
    output_size = 10

    x = jax.random.normal(k_x, (B, C, H, W), dtype=jnp.float32)
    params = prepare_params(init_params(k_p, input_size, output_size))

    out_padded = my_model_forward(x, params)
    out_padded = jax.block_until_ready(out_padded)
    out = out_padded[:, :output_size]

    ref = reference_forward(x, params)[:, :output_size]
    assert out.shape == (B, output_size), out.shape
    max_err = float(jnp.max(jnp.abs(out - ref)))
    assert jnp.allclose(out, ref, atol=5e-2, rtol=5e-2), (
        f"mismatch vs reference, max abs err = {max_err}")

    print("KERNEL_OK")
</pallas_src>

<mosaic_0001>
module attributes {stable_mosaic.version = 11 : i64} {
  func.func @mlp_kernel(%arg0: i32, %arg1: memref<128x256xbf16, #tpu.memory_space<vmem>>, %arg2: memref<256x512xbf16, #tpu.memory_space<vmem>>, %arg3: memref<1x512xf32, #tpu.memory_space<vmem>>, %arg4: memref<512x256xbf16, #tpu.memory_space<vmem>>, %arg5: memref<1x256xf32, #tpu.memory_space<vmem>>, %arg6: memref<256x128xbf16, #tpu.memory_space<vmem>>, %arg7: memref<1x128xf32, #tpu.memory_space<vmem>>, %arg8: memref<128x128xbf16, #tpu.memory_space<vmem>>, %arg9: memref<1x128xf32, #tpu.memory_space<vmem>>, %arg10: memref<128x128xf32, #tpu.memory_space<vmem>>) attributes {dimension_semantics = [#tpu.dimension_semantics<parallel>], iteration_bounds = array<i64: 2>, scalar_prefetch = 0 : i64, scratch_operands = 0 : i64, tpu.core_type = #tpu.core_type<tc>, window_params = [{transform_indices = @transform_0, window_bounds = array<i64: 128, 256>}, {pipeline_mode = #tpu.pipeline_mode<synchronous>, transform_indices = @transform_1, window_bounds = array<i64: 256, 512>}, {pipeline_mode = #tpu.pipeline_mode<synchronous>, transform_indices = @transform_2, window_bounds = array<i64: 1, 512>}, {pipeline_mode = #tpu.pipeline_mode<synchronous>, transform_indices = @transform_3, window_bounds = array<i64: 512, 256>}, {pipeline_mode = #tpu.pipeline_mode<synchronous>, transform_indices = @transform_4, window_bounds = array<i64: 1, 256>}, {pipeline_mode = #tpu.pipeline_mode<synchronous>, transform_indices = @transform_5, window_bounds = array<i64: 256, 128>}, {pipeline_mode = #tpu.pipeline_mode<synchronous>, transform_indices = @transform_6, window_bounds = array<i64: 1, 128>}, {pipeline_mode = #tpu.pipeline_mode<synchronous>, transform_indices = @transform_7, window_bounds = array<i64: 128, 128>}, {pipeline_mode = #tpu.pipeline_mode<synchronous>, transform_indices = @transform_8, window_bounds = array<i64: 1, 128>}, {transform_indices = @transform_9, window_bounds = array<i64: 128, 128>}]} {
    %c0 = arith.constant 0 : index
    %c0_0 = arith.constant 0 : index
    %0 = vector.load %arg1[%c0, %c0_0] : memref<128x256xbf16, #tpu.memory_space<vmem>>, vector<128x256xbf16>
    %c0_1 = arith.constant 0 : index
    %c0_2 = arith.constant 0 : index
    %1 = vector.load %arg2[%c0_1, %c0_2] : memref<256x512xbf16, #tpu.memory_space<vmem>>, vector<256x512xbf16>
    %cst = arith.constant dense<0.000000e+00> : vector<128x512xf32>
    %2 = tpu.matmul %0, %1, %cst {dimension_numbers = #tpu.dot_dimension_numbers<[1], [0], [0], [1], [0, 0, 1, 1], [], []>} : vector<128x256xbf16>, vector<256x512xbf16>, vector<128x512xf32> -> vector<128x512xf32>
    %c0_3 = arith.constant 0 : index
    %c0_4 = arith.constant 0 : index
    %3 = vector.load %arg3[%c0_3, %c0_4] : memref<1x512xf32, #tpu.memory_space<vmem>>, vector<1x512xf32>
    %4 = vector.broadcast %3 : vector<1x512xf32> to vector<128x512xf32>
    %5 = arith.addf %2, %4 : vector<128x512xf32>
    %cst_5 = arith.constant 0.000000e+00 : f32
    %6 = vector.broadcast %cst_5 : f32 to vector<128x512xf32>
    %7 = arith.maximumf %5, %6 : vector<128x512xf32>
    %8 = arith.truncf %7 : vector<128x512xf32> to vector<128x512xbf16>
    %c0_6 = arith.constant 0 : index
    %c0_7 = arith.constant 0 : index
    %9 = vector.load %arg4[%c0_6, %c0_7] : memref<512x256xbf16, #tpu.memory_space<vmem>>, vector<512x256xbf16>
    %cst_8 = arith.constant dense<0.000000e+00> : vector<128x256xf32>
    %10 = tpu.matmul %8, %9, %cst_8 {dimension_numbers = #tpu.dot_dimension_numbers<[1], [0], [0], [1], [0, 0, 1, 1], [], []>} : vector<128x512xbf16>, vector<512x256xbf16>, vector<128x256xf32> -> vector<128x256xf32>
    %c0_9 = arith.constant 0 : index
    %c0_10 = arith.constant 0 : index
    %11 = vector.load %arg5[%c0_9, %c0_10] : memref<1x256xf32, #tpu.memory_space<vmem>>, vector<1x256xf32>
    %12 = vector.broadcast %11 : vector<1x256xf32> to vector<128x256xf32>
    %13 = arith.addf %10, %12 : vector<128x256xf32>
    %cst_11 = arith.constant 0.000000e+00 : f32
    %14 = vector.broadcast %cst_11 : f32 to vector<128x256xf32>
    %15 = arith.maximumf %13, %14 : vector<128x256xf32>
    %16 = arith.truncf %15 : vector<128x256xf32> to vector<128x256xbf16>
    %c0_12 = arith.constant 0 : index
    %c0_13 = arith.constant 0 : index
    %17 = vector.load %arg6[%c0_12, %c0_13] : memref<256x128xbf16, #tpu.memory_space<vmem>>, vector<256x128xbf16>
    %cst_14 = arith.constant dense<0.000000e+00> : vector<128x128xf32>
    %18 = tpu.matmul %16, %17, %cst_14 {dimension_numbers = #tpu.dot_dimension_numbers<[1], [0], [0], [1], [0, 0, 1, 1], [], []>} : vector<128x256xbf16>, vector<256x128xbf16>, vector<128x128xf32> -> vector<128x128xf32>
    %c0_15 = arith.constant 0 : index
    %c0_16 = arith.constant 0 : index
    %19 = vector.load %arg7[%c0_15, %c0_16] : memref<1x128xf32, #tpu.memory_space<vmem>>, vector<1x128xf32>
    %20 = vector.broadcast %19 : vector<1x128xf32> to vector<128x128xf32>
    %21 = arith.addf %18, %20 : vector<128x128xf32>
    %cst_17 = arith.constant 0.000000e+00 : f32
    %22 = vector.broadcast %cst_17 : f32 to vector<128x128xf32>
    %23 = arith.maximumf %21, %22 : vector<128x128xf32>
    %24 = arith.truncf %23 : vector<128x128xf32> to vector<128x128xbf16>
    %c0_18 = arith.constant 0 : index
    %c0_19 = arith.constant 0 : index
    %25 = vector.load %arg8[%c0_18, %c0_19] : memref<128x128xbf16, #tpu.memory_space<vmem>>, vector<128x128xbf16>
    %cst_20 = arith.constant dense<0.000000e+00> : vector<128x128xf32>
    %26 = tpu.matmul %24, %25, %cst_20 {dimension_numbers = #tpu.dot_dimension_numbers<[1], [0], [0], [1], [0, 0, 1, 1], [], []>} : vector<128x128xbf16>, vector<128x128xbf16>, vector<128x128xf32> -> vector<128x128xf32>
    %c0_21 = arith.constant 0 : index
    %c0_22 = arith.constant 0 : index
    %27 = vector.load %arg9[%c0_21, %c0_22] : memref<1x128xf32, #tpu.memory_space<vmem>>, vector<1x128xf32>
    %28 = vector.broadcast %27 : vector<1x128xf32> to vector<128x128xf32>
    %29 = arith.addf %26, %28 : vector<128x128xf32>
    %c0_23 = arith.constant 0 : index
    %c0_24 = arith.constant 0 : index
    %30 = vector.load %arg10[%c0_23, %c0_24] : memref<128x128xf32, #tpu.memory_space<vmem>>, vector<128x128xf32>
    tpu.vector_store %arg10[%c0_23, %c0_24], %29 {strides = array<i32>} : memref<128x128xf32, #tpu.memory_space<vmem>>, vector<128x128xf32>,
    return
  }
  func.func @transform_0(%arg0: i32) -> (i32, i32) {
    %c0_i32 = arith.constant 0 : i32
    %c0_i32_0 = arith.constant 0 : i32
    return %arg0, %c0_i32 : i32, i32
  }
  func.func @transform_1(%arg0: i32) -> (i32, i32) {
    %c0_i32 = arith.constant 0 : i32
    %c0_i32_0 = arith.constant 0 : i32
    %c0_i32_1 = arith.constant 0 : i32
    return %c0_i32, %c0_i32_0 : i32, i32
  }
  func.func @transform_2(%arg0: i32) -> (i32, i32) {
    %c0_i32 = arith.constant 0 : i32
    %c0_i32_0 = arith.constant 0 : i32
    %c0_i32_1 = arith.constant 0 : i32
    return %c0_i32, %c0_i32_0 : i32, i32
  }
  func.func @transform_3(%arg0: i32) -> (i32, i32) {
    %c0_i32 = arith.constant 0 : i32
    %c0_i32_0 = arith.constant 0 : i32
    %c0_i32_1 = arith.constant 0 : i32
    return %c0_i32, %c0_i32_0 : i32, i32
  }
  func.func @transform_4(%arg0: i32) -> (i32, i32) {
    %c0_i32 = arith.constant 0 : i32
    %c0_i32_0 = arith.constant 0 : i32
    %c0_i32_1 = arith.constant 0 : i32
    return %c0_i32, %c0_i32_0 : i32, i32
  }
  func.func @transform_5(%arg0: i32) -> (i32, i32) {
    %c0_i32 = arith.constant 0 : i32
    %c0_i32_0 = arith.constant 0 : i32
    %c0_i32_1 = arith.constant 0 : i32
    return %c0_i32, %c0_i32_0 : i32, i32
  }
  func.func @transform_6(%arg0: i32) -> (i32, i32) {
    %c0_i32 = arith.constant 0 : i32
    %c0_i32_0 = arith.constant 0 : i32
    %c0_i32_1 = arith.constant 0 : i32
    return %c0_i32, %c0_i32_0 : i32, i32
  }
  func.func @transform_7(%arg0: i32) -> (i32, i32) {
    %c0_i32 = arith.constant 0 : i32
    %c0_i32_0 = arith.constant 0 : i32
    %c0_i32_1 = arith.constant 0 : i32
    return %c0_i32, %c0_i32_0 : i32, i32
  }
  func.func @transform_8(%arg0: i32) -> (i32, i32) {
    %c0_i32 = arith.constant 0 : i32
    %c0_i32_0 = arith.constant 0 : i32
    %c0_i32_1 = arith.constant 0 : i32
    return %c0_i32, %c0_i32_0 : i32, i32
  }
  func.func @transform_9(%arg0: i32) -> (i32, i32) {
    %c0_i32 = arith.constant 0 : i32
    %c0_i32_0 = arith.constant 0 : i32
    return %arg0, %c0_i32 : i32, i32
  }
}

</mosaic_0001>

<bundles_post_ra>
// kernel: my_model_forward.1
= control target key start
LH: loop header
LB: loop body
LE: loop exit
PB: predicated region body
PF: predicated region fallthrough
CT: control target
= control target key end

     0   :  { %14 = vsyncpa [#allocation3], 0  ;;  %s3891_s0 = inlined_call_operand.vmem [shape: bf16[256,256], index: 0, kind: input, shape index: {}]   ;;  %s3892_s1 = inlined_call_operand.vmem [shape: bf16[256,512], index: 1, kind: input, shape index: {}]   ;;  %s3893_s2 = inlined_call_operand.vmem [shape: f32[1,512], index: 2, kind: input, shape index: {}]   ;;  %s3894_s3 = inlined_call_operand.vmem [shape: bf16[512,256], index: 3, kind: input, shape index: {}]   ;;  %s3895_s4 = inlined_call_operand.vmem [shape: f32[1,256], index: 4, kind: input, shape index: {}]   ;;  %s3896_s5 = inlined_call_operand.vmem [shape: bf16[256,128], index: 5, kind: input, shape index: {}]   ;;  %s3897_s6 = inlined_call_operand.vmem [shape: f32[1,128], index: 6, kind: input, shape index: {}]   ;;  %s3898_s7 = inlined_call_operand.vmem [shape: bf16[128,128], index: 7, kind: input, shape index: {}]   ;;  %s3899_s8 = inlined_call_operand.vmem [shape: f32[1,128], index: 8, kind: input, shape index: {}]   ;;  %s3900_s9 = inlined_call_operand.hbm [shape: f32[256,128], index: 9, kind: output, shape index: {}]  }
   0x1   :  { %16 = vsyncpa [#allocation3 + $0x1], 0  ;;  %s3107_s30 = smov 0   ;;  %s3109_s10 = smov 0  }
   0x2   :  { %s3111_s11 = smov 0   ;;  %s3113_s12 = smov 0  }
   0x3 LB: > { %s3128_s13 = sadd.s32 4294967295, %s3052_s12   ;;  %s2348_s14 = sadd.s32 4294967294, %s3052_s12   ;;  %s3052_s12 = sphi %s3113_s12, %s3908_s12   ;;  %s3048_s11 = sphi %s3111_s11, %s3907_s11   ;;  %s3044_s10 = sphi %s3109_s10, %s3906_s10   ;;  %s3040_s30 = sphi %s3107_s30, %s3905_s30  }
   0x4   : > { %s3132_s15 = sadd.s32 1, %s3052_s12   ;;  %s223_s16 = sadd.s32 1, %s3048_s11 }
   0x5   : > { %s220_s17 = ssub.s32 %s3052_s12, %s3132_s15  ;;  %p233_p0 = scmp.ne.s32.totalorder %s3048_s11, %s3044_s10 }
   0x6   : > { %p221_p1 = scmp.eq.s32.totalorder %s220_s17, 0  ;;  %p234_p2 = scmp.eq.s32.totalorder %s3128_s13, 1 }
   0x7   : > { %p239_p3 = scmp.ne.s32.totalorder %s3044_s10, %s3040_s30  ;;  %p240_p4 = scmp.eq.s32.totalorder %s2348_s14, 1 }
   0x8   : > { %s3143_s18 = scalar_select %p221_p1, %s3048_s11, %s223_s16  }
   0x9   : > { %p3145_p5 = por %p234_p2, %p233_p0  ;;  %p3149_p6 = por %p240_p4, %p239_p3 }
   0xa   : > { %3901 = sst [smem:[#allocation5_spill]] %s3143_s18  ;;  %p2351_p7 = scmp.ge.s32.totalorder %s3052_s12, 1 }
   0xb   : > { %p292_p8 = scmp.lt.s32.totalorder %s3052_s12, 3 }
   0xd   : > { %p293_p9 = pnand %p2351_p7, %p292_p8 }
   0xe   : > { %v2750_v0 = vld [vmem:[%s3892_s1 + $0x4] ss:$16 sps:$4 sm:$0xff] (!%p293_p9)   ;;  %v2752_v1 = vld [vmem:[%s3892_s1] ss:$16 sps:$4 sm:$0xff] (!%p293_p9)   ;;  %s2353_s16 = sshll.u32 (!%p293_p9), %s3128_s13, 4  ;;  %s326_s25 = sand.u32 (!%p293_p9), 1, %s3044_s10  }
   0xf   : > { %296 = sbr.rel (%p293_p9) target bundleno = 1098 (0x44a), region = 56  ;;  %840 = vmatprep.subr.bf16.mxu0 (!%p293_p9), %v2750_v0  ;;  %v2753_v2 = vld [vmem:[%s3892_s1 + $0x24] ss:$16 sps:$4 sm:$0xff] (!%p293_p9)   ;;  %v2755_v3 = vld [vmem:[%s3892_s1 + $0x20] ss:$16 sps:$4 sm:$0xff] (!%p293_p9)   ;;  %p330_p10 = scmp.lt.s32.totalorder (!%p293_p9), %s2353_s16, 31 }
  0x10   : > { %841 = vmatpush1.bf16.msra.mxu0 (!%p293_p9), %v2752_v1  ;;  %v2756_v4 = vld [vmem:[%s3892_s1 + $0x44] ss:$16 sps:$4 sm:$0xff] (!%p293_p9)   ;;  %v2758_v5 = vld [vmem:[%s3892_s1 + $0x40] ss:$16 sps:$4 sm:$0xff] (!%p293_p9)   ;;  %v2798_v14 = vld [vmem:[%s3892_s1 + $0xc] ss:$16 sps:$4 sm:$0xff] (!%p293_p9)  }
  0x11   : > { %842 = vmatprep.subr.bf16.mxu0 (!%p293_p9), %v2753_v2  ;;  %v2759_v6 = vld [vmem:[%s3892_s1 + $0x64] ss:$16 sps:$4 sm:$0xff] (!%p293_p9)   ;;  %v2761_v7 = vld [vmem:[%s3892_s1 + $0x60] ss:$16 sps:$4 sm:$0xff] (!%p293_p9)   ;;  %v2800_v15 = vld [vmem:[%s3892_s1 + $0x8] ss:$16 sps:$4 sm:$0xff] (!%p293_p9)   ;;  %953 = vmatprep.subr.bf16.mxu1 (!%p293_p9), %v2798_v14 }
  0x12   : > { %v2762_v8 = vld [vmem:[%s3892_s1 + $0x84] ss:$16 sps:$4 sm:$0xff] (!%p293_p9)   ;;  %v2764_v9 = vld [vmem:[%s3892_s1 + $0x80] ss:$16 sps:$4 sm:$0xff] (!%p293_p9)   ;;  %v2804_v18 = vld [vmem:[%s3892_s1 + $0x2c] ss:$16 sps:$4 sm:$0xff] (!%p293_p9)   ;;  %954 = vmatpush1.bf16.msra.mxu1 (!%p293_p9), %v2800_v15 }
  0x13   : > { %v2765_v10 = vld [vmem:[%s3892_s1 + $0xa4] ss:$16 sps:$4 sm:$0xff] (!%p293_p9)   ;;  %v2767_v11 = vld [vmem:[%s3892_s1 + $0xa0] ss:$16 sps:$4 sm:$0xff] (!%p293_p9)   ;;  %v2806_v19 = vld [vmem:[%s3892_s1 + $0x28] ss:$16 sps:$4 sm:$0xff] (!%p293_p9)   ;;  %955 = vmatprep.subr.bf16.mxu1 (!%p293_p9), %v2804_v18 }
  0x14   : > { %843 = vmatpush1.bf16.msra.mxu0 (!%p293_p9), %v2755_v3  ;;  %v2768_v12 = vld [vmem:[%s3892_s1 + $0xc4] ss:$16 sps:$4 sm:$0xff] (!%p293_p9)   ;;  %v2770_v13 = vld [vmem:[%s3892_s1 + $0xc0] ss:$16 sps:$4 sm:$0xff] (!%p293_p9)   ;;  %v2807_v20 = vld [vmem:[%s3892_s1 + $0x4c] ss:$16 sps:$4 sm:$0xff] (!%p293_p9)  }
  0x15   : > { %844 = vmatprep.subr.bf16.mxu0 (!%p293_p9), %v2756_v4  ;;  %v2771_v16 = vld [vmem:[%s3892_s1 + $0xe4] ss:$16 sps:$4 sm:$0xff] (!%p293_p9)   ;;  %v2773_v21 = vld [vmem:[%s3892_s1 + $0xe0] ss:$16 sps:$4 sm:$0xff] (!%p293_p9)   ;;  %v2809_v23 = vld [vmem:[%s3892_s1 + $0x48] ss:$16 sps:$4 sm:$0xff] (!%p293_p9)  }
  0x16   : > { %s3910_s16 = smov (!%p330_p10, %s2353_s16), 31  ;;  %v2774_v22 = vld [vmem:[%s3892_s1 + $0x104] ss:$16 sps:$4 sm:$0xff]   ;;  %956 = vmatpush1.bf16.msra.mxu1 %v2806_v19  ;;  %v2813_v24 = vld [vmem:[%s3892_s1 + $0x6c] ss:$16 sps:$4 sm:$0xff]   ;;  %s2352_s26 = sshll.u32 %s326_s25, 7 }
  0x17   : > { %s2531_s21 = sshll.u32 %s3910_s16, 3  ;;  %957 = vmatprep.subr.bf16.mxu1 %v2807_v20  ;;  %v2776_v25 = vld [vmem:[%s3892_s1 + $0x100] ss:$16 sps:$4 sm:$0xff]   ;;  %v2777_v26 = vld [vmem:[%s3892_s1 + $0x124] ss:$16 sps:$4 sm:$0xff]   ;;  %s3821_s16 = scalar_lea.vmem [#allocation2], %s2352_s26 }
  0x18   : > { %845 = vmatpush1.bf16.msra.mxu0 %v2758_v5  ;;  %s3198_s28 = scalar_lea.vmem %s3891_s0, %s2531_s21  ;;  %v2815_v27 = vld [vmem:[%s3892_s1 + $0x68] ss:$16 sps:$4 sm:$0xff]   ;;  %v2816_v28 = vld [vmem:[%s3892_s1 + $0x8c] ss:$16 sps:$4 sm:$0xff]   ;;  %v2779_v29 = vld [vmem:[%s3892_s1 + $0x120] ss:$16 sps:$4 sm:$0xff]  }
  0x19   : > { %846 = vmatprep.subr.bf16.mxu0 %v2759_v6  ;;  %v2803_v17 = vld [vmem:[%s3198_s28 + $0x4] ss:$8 sps:$4 sm:$0xff]   ;;  %v2818_v31 = vld [vmem:[%s3892_s1 + $0x88] ss:$16 sps:$4 sm:$0xff]   ;;  %v2782_v33 = vld [vmem:[%s3892_s1 + $0x140] ss:$16 sps:$4 sm:$0xff]  }
  0x1a   : > { %872 = vmatprep.mubr.bf16.mxu0 %v2803_v17  ;;  %985 = vmatprep.mubr.bf16.mxu1 %v2803_v17  ;;  %v2780_v30 = vld [vmem:[%s3892_s1 + $0x144] ss:$16 sps:$4 sm:$0xff]   ;;  %v2822_v32 = vld [vmem:[%s3892_s1 + $0xac] ss:$16 sps:$4 sm:$0xff]   ;;  %v2824_v35 = vld [vmem:[%s3892_s1 + $0xa8] ss:$16 sps:$4 sm:$0xff]  }
  0x1b   : > { %958 = vmatpush1.bf16.msra.mxu1 %v2809_v23  ;;  %v2783_v34 = vld [vmem:[%s3892_s1 + $0x164] ss:$16 sps:$4 sm:$0xff]   ;;  %v2825_v36 = vld [vmem:[%s3892_s1 + $0xcc] ss:$16 sps:$4 sm:$0xff]   ;;  %v2785_v37 = vld [vmem:[%s3892_s1 + $0x160] ss:$16 sps:$4 sm:$0xff]  }
  0x1c   : > { %847 = vmatpush1.bf16.msra.mxu0 %v2761_v7  ;;  %959 = vmatprep.subr.bf16.mxu1 %v2813_v24  ;;  %v2786_v38 = vld [vmem:[%s3892_s1 + $0x184] ss:$16 sps:$4 sm:$0xff]   ;;  %v2827_v39 = vld [vmem:[%s3892_s1 + $0xc8] ss:$16 sps:$4 sm:$0xff]   ;;  %v2831_v40 = vld [vmem:[%s3892_s1 + $0xec] ss:$16 sps:$4 sm:$0xff]  }
  0x1d   : > { %848 = vmatprep.subr.bf16.mxu0 %v2762_v8  ;;  %v2788_v41 = vld [vmem:[%s3892_s1 + $0x180] ss:$16 sps:$4 sm:$0xff]   ;;  %v2789_v42 = vld [vmem:[%s3892_s1 + $0x1a4] ss:$16 sps:$4 sm:$0xff]   ;;  %v2833_v43 = vld [vmem:[%s3892_s1 + $0xe8] ss:$16 sps:$4 sm:$0xff]  }
  0x1e   : > { %v2834_v44 = vld [vmem:[%s3892_s1 + $0x10c] ss:$16 sps:$4 sm:$0xff]   ;;  %v2791_v45 = vld [vmem:[%s3892_s1 + $0x1a0] ss:$16 sps:$4 sm:$0xff]   ;;  %v2792_v46 = vld [vmem:[%s3892_s1 + $0x1c4] ss:$16 sps:$4 sm:$0xff]  }
  0x1f   : > { %960 = vmatpush1.bf16.msra.mxu1 %v2815_v27  ;;  %v2836_v47 = vld [vmem:[%s3892_s1 + $0x108] ss:$16 sps:$4 sm:$0xff]   ;;  %v2840_v48 = vld [vmem:[%s3892_s1 + $0x12c] ss:$16 sps:$4 sm:$0xff]   ;;  %v2794_v49 = vld [vmem:[%s3892_s1 + $0x1c0] ss:$16 sps:$4 sm:$0xff]  }
  0x20   : > { %849 = vmatpush1.bf16.msra.mxu0 %v2764_v9  ;;  %961 = vmatprep.subr.bf16.mxu1 %v2816_v28  ;;  %v2795_v50 = vld [vmem:[%s3892_s1 + $0x1e4] ss:$16 sps:$4 sm:$0xff]   ;;  %v2842_v51 = vld [vmem:[%s3892_s1 + $0x128] ss:$16 sps:$4 sm:$0xff]   ;;  %v2843_v52 = vld [vmem:[%s3892_s1 + $0x14c] ss:$16 sps:$4 sm:$0xff]  }
  0x21   : > { %850 = vmatprep.subr.bf16.mxu0 %v2765_v10  ;;  %v2797_v53 = vld [vmem:[%s3892_s1 + $0x1e0] ss:$16 sps:$4 sm:$0xff]   ;;  %v2872_v54 = vld [vmem:[%s3894_s3 + $0x4] ss:$8 sps:$4 sm:$0xff]   ;;  %v2845_v55 = vld [vmem:[%s3892_s1 + $0x148] ss:$16 sps:$4 sm:$0xff]  }
  0x22   : > { %v2801_v56 = vld [vmem:[%s3198_s28] ss:$8 sps:$4 sm:$0xff]   ;;  %v2849_v57 = vld [vmem:[%s3892_s1 + $0x16c] ss:$16 sps:$4 sm:$0xff]   ;;  %v2873_v63 = vld [vmem:[%s3894_s3 + $0x10] ss:$8 sps:$4 sm:$0xff]  }
  0x23   : > { %962 = vmatpush1.bf16.msra.mxu1 %v2818_v31  ;;  %v2810_v58 = vld [vmem:[%s3198_s28 + $0x14] ss:$8 sps:$4 sm:$0xff]   ;;  %v2870_v59 = vld [vmem:[%s3894_s3] ss:$8 sps:$4 sm:$0xff]   ;;  %v2812_v0 = vld [vmem:[%s3198_s28 + $0x10] ss:$8 sps:$4 sm:$0xff]  }
  0x24   : > { %851 = vmatpush1.bf16.msra.mxu0 %v2767_v11  ;;  %963 = vmatprep.subr.bf16.mxu1 %v2822_v32  ;;  %v2875_v60 = vld [vmem:[%s3894_s3 + $0x14] ss:$8 sps:$4 sm:$0xff]   ;;  %v2851_v61 = vld [vmem:[%s3892_s1 + $0x168] ss:$16 sps:$4 sm:$0xff]   ;;  %v2878_v1 = vld [vmem:[%s3894_s3 + $0x24] ss:$8 sps:$4 sm:$0xff]  }
  0x25   : > { %852 = vmatprep.subr.bf16.mxu0 %v2768_v12  ;;  %v2852_v62 = vld [vmem:[%s3892_s1 + $0x18c] ss:$16 sps:$4 sm:$0xff]   ;;  %v2854_v2 = vld [vmem:[%s3892_s1 + $0x188] ss:$16 sps:$4 sm:$0xff]   ;;  %s2532_s14 = sshll.u32 %s3128_s13, 11  ;;  %s2286_s17 = sshll.u32 %s3821_s16, 4  ;;  %s3843_s17 = int_to_ptr.vmem [resolvable:$true] %s2286_s17 }
  0x26   : > { %v2819_v3 = vld [vmem:[%s3198_s28 + $0x24] ss:$8 sps:$4 sm:$0xff]   ;;  %v2860_v5 = vld [vmem:[%s3892_s1 + $0x1a8] ss:$16 sps:$4 sm:$0xff]   ;;  %v2881_v8 = vld [vmem:[%s3894_s3 + $0x34] ss:$8 sps:$4 sm:$0xff]   ;;  %s3841_s23 = scalar_lea.hbm %s3900_s9, %s2532_s14 }
  0x27   : > { %964 = vmatpush1.bf16.msra.mxu1 %v2824_v35  ;;  %v2858_v4 = vld [vmem:[%s3892_s1 + $0x1ac] ss:$16 sps:$4 sm:$0xff]   ;;  %v2876_v6 = vld [vmem:[%s3894_s3 + $0x20] ss:$8 sps:$4 sm:$0xff]   ;;  %v2879_v9 = vld [vmem:[%s3894_s3 + $0x30] ss:$8 sps:$4 sm:$0xff]  }
  0x28   : > { %853 = vmatpush1.bf16.msra.mxu0 %v2770_v13  ;;  %965 = vmatprep.subr.bf16.mxu1 %v2825_v36  ;;  %v2861_v7 = vld [vmem:[%s3892_s1 + $0x1cc] ss:$16 sps:$4 sm:$0xff]   ;;  %v2863_v11 = vld [vmem:[%s3892_s1 + $0x1c8] ss:$16 sps:$4 sm:$0xff]   ;;  %s3850_s13 = scalar_lea.sflag [#allocation3], %s326_s25  ;;  %s2990_s24 = scalar_lea.vmem %s3843_s17, 2048 }
  0x29   : > { %854 = vmatprep.subr.bf16.mxu0 %v2771_v16  ;;  %v2884_v10 = vld [vmem:[%s3894_s3 + $0x44] ss:$8 sps:$4 sm:$0xff]   ;;  %v2821_v12 = vld [vmem:[%s3198_s28 + $0x20] ss:$8 sps:$4 sm:$0xff]   ;;  %v2828_v14 = vld [vmem:[%s3198_s28 + $0x34] ss:$8 sps:$4 sm:$0xff]   ;;  %p2991_p11 = scmp.ne.s32.totalorder %s3843_s17, %s2990_s24 }
  0x2a   : > { %v2867_v13 = vld [vmem:[%s3892_s1 + $0x1ec] ss:$16 sps:$4 sm:$0xff]   ;;  %v2882_v15 = vld [vmem:[%s3894_s3 + $0x40] ss:$8 sps:$4 sm:$0xff]   ;;  %v2885_v18 = vld [vmem:[%s3894_s3 + $0x50] ss:$8 sps:$4 sm:$0xff]  }
  0x2b   : > { %966 = vmatpush1.bf16.msra.mxu1 %v2827_v39  ;;  %v2887_v16 = vld [vmem:[%s3894_s3 + $0x54] ss:$8 sps:$4 sm:$0xff]   ;;  %v2869_v17 = vld [vmem:[%s3892_s1 + $0x1e8] ss:$16 sps:$4 sm:$0xff]   ;;  %v2890_v19 = vld [vmem:[%s3894_s3 + $0x64] ss:$8 sps:$4 sm:$0xff]   ;;  %p2992_p12 = pnand %p2991_p11, %p3145_p5 }
  0x2c   : > { %855 = vmatpush1.bf16.msra.mxu0 %v2773_v21  ;;  %967 = vmatprep.subr.bf16.mxu1 %v2831_v40  ;;  %v2830_v20 = vld [vmem:[%s3198_s28 + $0x30] ss:$8 sps:$4 sm:$0xff]   ;;  %v2837_v21 = vld [vmem:[%s3198_s28 + $0x44] ss:$8 sps:$4 sm:$0xff]   ;;  %v2893_v23 = vld [vmem:[%s3894_s3 + $0x74] ss:$8 sps:$4 sm:$0xff]  }
  0x2d   : > { %856 = vmatprep.subr.bf16.mxu0 %v2774_v22  ;;  %v2888_v22 = vld [vmem:[%s3894_s3 + $0x60] ss:$8 sps:$4 sm:$0xff]   ;;  %v2891_v24 = vld [vmem:[%s3894_s3 + $0x70] ss:$8 sps:$4 sm:$0xff]   ;;  %v2846_v27 = vld [vmem:[%s3198_s28 + $0x54] ss:$8 sps:$4 sm:$0xff]   ;;  %p2993_p13 = pneg %p2992_p12 }
  0x2e   : > { %v2894_v28 = vld [vmem:[%s3894_s3 + $0x80] ss:$8 sps:$4 sm:$0xff]   ;;  %v2902_v31 = vld [vmem:[%s3894_s3 + $0xa4] ss:$8 sps:$4 sm:$0xff]   ;;  %v2848_v32 = vld [vmem:[%s3198_s28 + $0x50] ss:$8 sps:$4 sm:$0xff]  }
  0x2f   : > { %968 = vmatpush1.bf16.msra.mxu1 %v2833_v43  ;;  %v2905_v35 = vld [vmem:[%s3894_s3 + $0xb4] ss:$8 sps:$4 sm:$0xff]   ;;  %v2903_v36 = vld [vmem:[%s3894_s3 + $0xb0] ss:$8 sps:$4 sm:$0xff]   ;;  %v2906_v40 = vld [vmem:[%s3894_s3 + $0xc0] ss:$8 sps:$4 sm:$0xff]  }
  0x30   : > { %857 = vmatpush1.bf16.msra.mxu0 %v2776_v25  ;;  %969 = vmatprep.subr.bf16.mxu1 %v2834_v44  ;;  %v2896_v25 = vld [vmem:[%s3894_s3 + $0x84] ss:$8 sps:$4 sm:$0xff]   ;;  %v2864_v39 = vld [vmem:[%s3198_s28 + $0x74] ss:$8 sps:$4 sm:$0xff]   ;;  %v2866_v43 = vld [vmem:[%s3198_s28 + $0x70] ss:$8 sps:$4 sm:$0xff]  }
  0x31   : > { %858 = vmatprep.subr.bf16.mxu0 %v2777_v26  ;;  %v2839_v26 = vld [vmem:[%s3198_s28 + $0x40] ss:$8 sps:$4 sm:$0xff]   ;;  %v2914_v44 = vld [vmem:[%s3894_s3 + $0xe4] ss:$8 sps:$4 sm:$0xff]   ;;  %s3054_s21 = smov [#allocation2]  }
  0x32   : > { %s2994_s18 = sshll.u32 %s3054_s21, 4  ;;  %s2995_s18 = int_to_ptr.vmem [resolvable:$false] %s2994_s18 }
  0x33   : > { %970 = vmatpush1.bf16.msra.mxu1 %v2836_v47  ;;  %v2915_v47 = vld [vmem:[%s3894_s3 + $0xf0] ss:$8 sps:$4 sm:$0xff]   ;;  %s2996_s26 = scalar_lea.vmem %s2995_s18, 4096  ;;  %p2997_p0 = scmp.lt.s32.totalorder %s3843_s17, %s2995_s18 }
  0x34   : > { %859 = vmatpush1.bf16.msra.mxu0 %v2779_v29  ;;  %971 = vmatprep.subr.bf16.mxu1 %v2840_v48  ;;  %v2899_v29 = vld [vmem:[%s3894_s3 + $0x94] ss:$8 sps:$4 sm:$0xff]   ;;  %v2920_v48 = vld [vmem:[%s3894_s3 + $0x104] ss:$8 sps:$4 sm:$0xff]   ;;  %p2998_p1 = scmp.lt.s32.totalorder %s2996_s26, %s2990_s24 }
  0x35   : > { %860 = vmatprep.subr.bf16.mxu0 %v2780_v30  ;;  %v2897_v30 = vld [vmem:[%s3894_s3 + $0x90] ss:$8 sps:$4 sm:$0xff]  }
  0x36   : > { %p2999_p2 = por %p2998_p1, %p2997_p0 }
  0x37   : > { %972 = vmatpush1.bf16.msra.mxu1 %v2842_v51 }
  0x38   : > { %861 = vmatpush1.bf16.msra.mxu0 %v2782_v33  ;;  %973 = vmatprep.subr.bf16.mxu1 %v2843_v52  ;;  %v2855_v33 = vld [vmem:[%s3198_s28 + $0x64] ss:$8 sps:$4 sm:$0xff]   ;;  %v3474_v52 = vld [vmem:[%s3893_s2] sm:$0xf]  ;;  %p3000_p3 = pnand %p2999_p2, %p2993_p13 }
  0x39   : > { %862 = vmatprep.subr.bf16.mxu0 %v2783_v34  ;;  %v2900_v34 = vld [vmem:[%s3894_s3 + $0xa0] ss:$8 sps:$4 sm:$0xff]  }
  0x3b   : > { %974 = vmatpush1.bf16.msra.mxu1 %v2845_v55 }
  0x3c   : > { %863 = vmatpush1.bf16.msra.mxu0 %v2785_v37  ;;  %975 = vmatprep.subr.bf16.mxu1 %v2849_v57  ;;  %v2908_v37 = vld [vmem:[%s3894_s3 + $0xc4] ss:$8 sps:$4 sm:$0xff]  }
  0x3d   : > { %864 = vmatprep.subr.bf16.mxu0 %v2786_v38  ;;  %v2857_v38 = vld [vmem:[%s3198_s28 + $0x60] ss:$8 sps:$4 sm:$0xff]  }
  0x3f   : > { %976 = vmatpush1.bf16.msra.mxu1 %v2851_v61 }
  0x40   : > { %865 = vmatpush1.bf16.msra.mxu0 %v2788_v41  ;;  %977 = vmatprep.subr.bf16.mxu1 %v2852_v62  ;;  %v2911_v41 = vld [vmem:[%s3894_s3 + $0xd4] ss:$8 sps:$4 sm:$0xff]  }
  0x41   : > { %866 = vmatprep.subr.bf16.mxu0 %v2789_v42  ;;  %v2909_v42 = vld [vmem:[%s3894_s3 + $0xd0] ss:$8 sps:$4 sm:$0xff]  }
  0x43   : > { %978 = vmatpush1.bf16.msra.mxu1 %v2854_v2 }
  0x44   : > { %867 = vmatpush1.bf16.msra.mxu0 %v2791_v45  ;;  %979 = vmatprep.subr.bf16.mxu1 %v2858_v4  ;;  %v2912_v45 = vld [vmem:[%s3894_s3 + $0xe0] ss:$8 sps:$4 sm:$0xff]  }
  0x45   : > { %868 = vmatprep.subr.bf16.mxu0 %v2792_v46  ;;  %v2917_v46 = vld [vmem:[%s3894_s3 + $0xf4] ss:$8 sps:$4 sm:$0xff]  }
  0x47   : > { %980 = vmatpush1.bf16.msra.mxu1 %v2860_v5 }
  0x48   : > { %869 = vmatpush1.bf16.msra.mxu0 %v2794_v49  ;;  %981 = vmatprep.subr.bf16.mxu1 %v2861_v7  ;;  %v420_v49 = vlaneseq  ;;  %v2969_v7 = vld [vmem:[%s3896_s5 + $0x8] sm:$0xff]  }
  0x49   : > { %870 = vmatprep.subr.bf16.mxu0 %v2795_v50 }
  0x4a   : > { %v3468_v50 = vshrl.u32 %v420_v49, 7 }
  0x4b   : > { %982 = vmatpush1.bf16.msra.mxu1 %v2863_v11 }
  0x4c   : > { %871 = vmatpush1.bf16.msra.mxu0 %v2797_v53  ;;  %983 = vmatprep.subr.bf16.mxu1 %v2867_v13  ;;  %v422_v51 = vsub.s32 0, %v3468_v50  ;;  %v426_v53 = vsub.s32 1, %v3468_v50 }
  0x4d   : > { %1558 = vmatprep.subr.bf16.mxu0 %v2872_v54 }
  0x4e   : > { %v3480_v54 = vrot.slane %v3474_v52, %v422_v51  ;;  %v3485_v55 = vrot.slane %v3474_v52, %v426_v53 }
  0x4f   : > { %873 = vmatmul.mubr.bf16.vlgmr.msra.gmra.mrb[0].mxu0 %v2801_v56  ;;  %984 = vmatpush1.bf16.msra.mxu1 %v2869_v17 }
  0x50   : > { %882 = vmatprep.mubr.bf16.mxu0 %v2810_v58  ;;  %1559 = vmatpush1.bf16.msra.mxu0 %v2870_v59 }
  0x51   : > { %1560 = vmatprep.subr.bf16.mxu0 %v2875_v60 }
  0x52   : > { %986 = vmatmul.mubr.bf16.vlgmr.msra.gmra.mrb[0].mxu1 %v2801_v56 }
  0x53   : > { %995 = vmatprep.mubr.bf16.mxu1 %v2810_v58 }
  0x54   : > { %1561 = vmatpush1.bf16.msra.mxu0 %v2873_v63  ;;  %v2966_v63 = vld [vmem:[%s3896_s5 + $0x40] sm:$0xff]  }
  0x55   : > { %1562 = vmatprep.subr.bf16.mxu0 %v2878_v1  ;;  %v2968_v1 = vld [vmem:[%s3896_s5 + $0x48] sm:$0xff]   ;;  %2533 = vmatprep.subr.bf16.mxu1 %v2966_v63 }
  0x57   : > { %883 = vmatmul.mubr.bf16.gmra.mrb[4].mxu0 %v2812_v0 }
  0x58   : > { %892 = vmatprep.mubr.bf16.mxu0 %v2819_v3  ;;  %1563 = vmatpush1.bf16.msra.mxu0 %v2876_v6 }
  0x59   : > { %1564 = vmatprep.subr.bf16.mxu0 %v2881_v8 }
  0x5a   : > { %996 = vmatmul.mubr.bf16.gmra.mrb[4].mxu1 %v2812_v0  ;;  %v2967_v0 = vld [vmem:[%s3896_s5] sm:$0xff]  }
  0x5b   : > { %1005 = vmatprep.mubr.bf16.mxu1 %v2819_v3  ;;  %2534 = vmatpush3.bf16.msra.mxu1 %v2967_v0 }
  0x5c   : > { %1565 = vmatpush1.bf16.msra.mxu0 %v2879_v9  ;;  %2535 = vmatprep.subr.bf16.mxu1 %v2968_v1  ;;  %v2970_v9 = vld [vmem:[%s3896_s5 + $0x50] sm:$0xff]  }
  0x5d   : > { %1566 = vmatprep.subr.bf16.mxu0 %v2884_v10  ;;  %v2978_v1 = vld [vmem:[%s3896_s5 + $0x70] sm:$0xff]  }
  0x5f   : > { %893 = vmatmul.mubr.bf16.gmra.mrb[8].mxu0 %v2821_v12  ;;  %2536 = vmatpush3.bf16.msra.mxu1 %v2969_v7 }
  0x60   : > { %902 = vmatprep.mubr.bf16.mxu0 %v2828_v14  ;;  %1567 = vmatpush1.bf16.msra.mxu0 %v2882_v15  ;;  %v2923_v15 = vld [vmem:[%s3894_s3 + $0x114] ss:$8 sps:$4 sm:$0xff]  }
  0x61   : > { %1568 = vmatprep.subr.bf16.mxu0 %v2887_v16  ;;  %2537 = vmatprep.subr.bf16.mxu1 %v2970_v9  ;;  %v2935_v9 = vld [vmem:[%s3894_s3 + $0x154] ss:$8 sps:$4 sm:$0xff]  }
  0x62   : > { %1006 = vmatmul.mubr.bf16.gmra.mrb[8].mxu1 %v2821_v12  ;;  %v2918_v12 = vld [vmem:[%s3894_s3 + $0x100] ss:$8 sps:$4 sm:$0xff]  }
  0x63   : > { %1015 = vmatprep.mubr.bf16.mxu1 %v2828_v14 }
  0x64   : > { %1569 = vmatpush1.bf16.msra.mxu0 %v2885_v18  ;;  %v2971_v18 = vld [vmem:[%s3896_s5 + $0x10] sm:$0xff]  }
  0x65   : > { %1570 = vmatprep.subr.bf16.mxu0 %v2890_v19  ;;  %2538 = vmatpush3.bf16.msra.mxu1 %v2971_v18 }
  0x67   : > { %903 = vmatmul.mubr.bf16.gmra.mrb[12].mxu0 %v2830_v20 }
  0x68   : > { %912 = vmatprep.mubr.bf16.mxu0 %v2837_v21  ;;  %1571 = vmatpush1.bf16.msra.mxu0 %v2888_v22 }
  0x69   : > { %1572 = vmatprep.subr.bf16.mxu0 %v2893_v23  ;;  %v2921_v23 = vld [vmem:[%s3894_s3 + $0x110] ss:$8 sps:$4 sm:$0xff]  }
  0x6a   : > { %1016 = vmatmul.mubr.bf16.gmra.mrb[12].mxu1 %v2830_v20 }
  0x6b   : > { %1025 = vmatprep.mubr.bf16.mxu1 %v2837_v21  ;;  %v2972_v21 = vld [vmem:[%s3896_s5 + $0x58] sm:$0xff]  }
  0x6c   : > { %1573 = vmatpush1.bf16.msra.mxu0 %v2891_v24  ;;  %2539 = vmatprep.subr.bf16.mxu1 %v2972_v21 }
  0x6d   : > { %1574 = vmatprep.subr.bf16.mxu0 %v2896_v25 }
  0x6f   : > { %913 = vmatmul.mubr.bf16.gmra.mrb[16].mxu0 %v2839_v26 }
  0x70   : > { %922 = vmatprep.mubr.bf16.mxu0 %v2846_v27  ;;  %1575 = vmatpush1.bf16.msra.mxu0 %v2894_v28 }
  0x71   : > { %1576 = vmatprep.subr.bf16.mxu0 %v2899_v29  ;;  %v2973_v29 = vld [vmem:[%s3896_s5 + $0x18] sm:$0xff]  }
  0x72   : > { %1026 = vmatmul.mubr.bf16.gmra.mrb[16].mxu1 %v2839_v26  ;;  %v2926_v26 = vld [vmem:[%s3894_s3 + $0x124] ss:$8 sps:$4 sm:$0xff]  }
  0x73   : > { %1035 = vmatprep.mubr.bf16.mxu1 %v2846_v27  ;;  %2540 = vmatpush3.bf16.msra.mxu1 %v2973_v29 }
  0x74   : > { %1577 = vmatpush1.bf16.msra.mxu0 %v2897_v30 }
  0x75   : > { %1578 = vmatprep.subr.bf16.mxu0 %v2902_v31  ;;  %v430_v31 = vsub.s32 2, %v3468_v50 }
  0x77   : > { %923 = vmatmul.mubr.bf16.gmra.mrb[20].mxu0 %v2848_v32 }
  0x78   : > { %932 = vmatprep.mubr.bf16.mxu0 %v2855_v33  ;;  %1579 = vmatpush1.bf16.msra.mxu0 %v2900_v34 }
  0x79   : > { %1580 = vmatprep.subr.bf16.mxu0 %v2905_v35  ;;  %v2924_v35 = vld [vmem:[%s3894_s3 + $0x120] ss:$8 sps:$4 sm:$0xff]  }
  0x7a   : > { %1036 = vmatmul.mubr.bf16.gmra.mrb[20].mxu1 %v2848_v32  ;;  %v2974_v32 = vld [vmem:[%s3896_s5 + $0x60] sm:$0xff]  }
  0x7b   : > { %1045 = vmatprep.mubr.bf16.mxu1 %v2855_v33  ;;  %2541 = vmatprep.subr.bf16.mxu1 %v2974_v32 }
  0x7c   : > { %1581 = vmatpush1.bf16.msra.mxu0 %v2903_v36  ;;  %v434_v36 = vsub.s32 3, %v3468_v50 }
  0x7d   : > { %1582 = vmatprep.subr.bf16.mxu0 %v2908_v37 }
  0x7e   : > { %v3559_v49 = vrot.slane %v3474_v52, %v434_v36 }
  0x7f   : > { %933 = vmatmul.mubr.bf16.gmra.mrb[24].mxu0 %v2857_v38 }
  0x80   : > { %942 = vmatprep.mubr.bf16.mxu0 %v2864_v39  ;;  %1583 = vmatpush1.bf16.msra.mxu0 %v2906_v40 }
  0x81   : > { %1584 = vmatprep.subr.bf16.mxu0 %v2911_v41 }
  0x82   : > { %1046 = vmatmul.mubr.bf16.gmra.mrb[24].mxu1 %v2857_v38 }
  0x83   : > { %1055 = vmatprep.mubr.bf16.mxu1 %v2864_v39  ;;  %v2929_v39 = vld [vmem:[%s3894_s3 + $0x134] ss:$8 sps:$4 sm:$0xff]  }
  0x84   : > { %1585 = vmatpush1.bf16.msra.mxu0 %v2909_v42  ;;  %v2975_v42 = vld [vmem:[%s3896_s5 + $0x20] sm:$0xff]  }
  0x85   : > { %1586 = vmatprep.subr.bf16.mxu0 %v2914_v44  ;;  %2542 = vmatpush3.bf16.msra.mxu1 %v2975_v42  ;;  %v2941_v42 = vld [vmem:[%s3894_s3 + $0x174] ss:$8 sps:$4 sm:$0xff]  }
  0x87   : > { %943 = vmatmul.mubr.bf16.gmra.mrb[28].mxu0 %v2866_v43 }
  0x88   : > { %1587 = vmatpush1.bf16.msra.mxu0 %v2912_v45  ;;  %v3549_v45 = vrot.slane %v3474_v52, %v430_v31 }
  0x89   : > { %1588 = vmatprep.subr.bf16.mxu0 %v2917_v46  ;;  %v2976_v46 = vld [vmem:[%s3896_s5 + $0x68] sm:$0xff]  }
  0x8a   : > { %1056 = vmatmul.mubr.bf16.gmra.mrb[28].mxu1 %v2866_v43  ;;  %2543 = vmatprep.subr.bf16.mxu1 %v2976_v46 }
  0x8c   : > { %1589 = vmatpush1.bf16.msra.mxu0 %v2915_v47 }
  0x8d   : > { %1671 = vmatprep.subr.bf16.mxu0 %v2920_v48  ;;  %v2927_v48 = vld [vmem:[%s3894_s3 + $0x130] ss:$8 sps:$4 sm:$0xff]  }
 0x122   : > { %v874_v56 = vpop.f32.mrb[0].mxu0 }
 0x123   : > { %v875_v57 = vadd.f32 %v874_v56, %v3480_v54  ;;  %v876_v58 = vpop.f32.mrb[1].mxu0 }
 0x124   : > { %v877_v59 = vadd.f32 %v876_v58, %v3485_v55  ;;  %v878_v60 = vpop.f32.mrb[2].mxu0  ;;  %v2932_v58 = vld [vmem:[%s3894_s3 + $0x144] ss:$8 sps:$4 sm:$0xff]  }
 0x125   : > { %v879_v61 = vadd.f32 %v878_v60, %v3480_v54  ;;  %v880_v62 = vpop.f32.mrb[3].mxu0  ;;  %v1066_v3 = vmax.f32 %v875_v57, 0.0 }
 0x126   : > { %v881_v2 = vadd.f32 %v880_v62, %v3485_v55  ;;  %v1067_v5 = vmax.f32 %v877_v59, 0.0  ;;  %v2977_v62 = vld [vmem:[%s3896_s5 + $0x28] sm:$0xff]  }
 0x127   : > { %v1070_v4 = vmax.f32 %v879_v61, 0.0  ;;  %v987_v61 = vpop.f32.mrb[0].mxu1  ;;  %2544 = vmatpush3.bf16.msra.mxu1 %v2977_v62  ;;  %v2939_v62 = vld [vmem:[%s3894_s3 + $0x170] ss:$8 sps:$4 sm:$0xff]  }
 0x128   : > { %v1071_v6 = vmax.f32 %v881_v2, 0.0  ;;  %v988_v0 = vadd.f32 %v987_v61, %v3549_v45  ;;  %v989_v52 = vpop.f32.mrb[1].mxu1  ;;  %2545 = vmatprep.subr.bf16.mxu1 %v2978_v1  ;;  %v2944_v1 = vld [vmem:[%s3894_s3 + $0x184] ss:$8 sps:$4 sm:$0xff]  }
 0x129   : > { %v1130_v8 = vpack.c.bf16 %v1070_v4, %v1066_v3  ;;  %v2930_v4 = vld [vmem:[%s3894_s3 + $0x140] ss:$8 sps:$4 sm:$0xff]  }
 0x12a   : > { %v1131_v10 = vpack.c.bf16 %v1071_v6, %v1067_v5  ;;  %v884_v11 = vpop.f32.mrb[4].mxu0  ;;  %v990_v5 = vadd.f32 %v989_v52, %v3559_v49  ;;  %v991_v6 = vpop.f32.mrb[2].mxu1 }
 0x12b   : > { %v885_v13 = vadd.f32 %v884_v11, %v3480_v54  ;;  %v886_v14 = vpop.f32.mrb[5].mxu0  ;;  %v992_v11 = vadd.f32 %v991_v6, %v3549_v45 }
 0x12c   : > { %v887_v16 = vadd.f32 %v886_v14, %v3485_v55  ;;  %v888_v17 = vpop.f32.mrb[6].mxu0  ;;  %1590 = vmatprep.mubr.bf16.mxu0 %v1131_v10  ;;  %v1068_v10 = vmax.f32 %v988_v0, 0.0 }
 0x12d   : > { %v889_v19 = vadd.f32 %v888_v17, %v3480_v54  ;;  %v890_v20 = vpop.f32.mrb[7].mxu0  ;;  %1591 = vmatmul.mubr.bf16.vlgmr.msra.gmra.mrb[32].mxu0 %v1130_v8  ;;  %v1074_v24 = vmax.f32 %v885_v13, 0.0  ;;  %v2979_v17 = vld [vmem:[%s3896_s5 + $0x30] sm:$0xff]  }
 0x12e   : > { %v891_v22 = vadd.f32 %v890_v20, %v3485_v55  ;;  %1672 = vmatpush1.bf16.msra.mxu0 %v2918_v12  ;;  %v1075_v27 = vmax.f32 %v887_v16, 0.0  ;;  %v993_v12 = vpop.f32.mrb[3].mxu1  ;;  %v1072_v20 = vmax.f32 %v992_v11, 0.0  ;;  %2546 = vmatpush3.bf16.msra.mxu1 %v2979_v17  ;;  %v2947_v17 = vld [vmem:[%s3894_s3 + $0x194] ss:$8 sps:$4 sm:$0xff]  }
 0x12f   : > { %v1078_v25 = vmax.f32 %v889_v19, 0.0  ;;  %1673 = vmatprep.subr.bf16.mxu0 %v2923_v15  ;;  %v1069_v15 = vmax.f32 %v990_v5, 0.0  ;;  %v994_v16 = vadd.f32 %v993_v12, %v3559_v49  ;;  %v997_v31 = vpop.f32.mrb[4].mxu1  ;;  %v2942_v12 = vld [vmem:[%s3894_s3 + $0x180] ss:$8 sps:$4 sm:$0xff]  }
 0x130   : > { %v1079_v28 = vmax.f32 %v891_v22, 0.0  ;;  %v2933_v22 = vld [vmem:[%s3894_s3 + $0x150] ss:$8 sps:$4 sm:$0xff]  }
 0x131   : > { %v1134_v30 = vpack.c.bf16 %v1078_v25, %v1074_v24 }
 0x132   : > { %v1135_v33 = vpack.c.bf16 %v1079_v28, %v1075_v27  ;;  %1674 = vmatpush1.bf16.msra.mxu0 %v2921_v23  ;;  %v894_v34 = vpop.f32.mrb[8].mxu0  ;;  %v1073_v23 = vmax.f32 %v994_v16, 0.0  ;;  %v3593_v27 = vpack.c.bf16 %v1072_v20, %v1068_v10 }
 0x133   : > { %v895_v37 = vadd.f32 %v894_v34, %v3480_v54  ;;  %v896_v38 = vpop.f32.mrb[9].mxu0  ;;  %1675 = vmatprep.subr.bf16.mxu0 %v2926_v26  ;;  %v2938_v26 = vld [vmem:[%s3894_s3 + $0x164] ss:$8 sps:$4 sm:$0xff]   ;;  %v999_v34 = vpop.f32.mrb[5].mxu1 }
 0x134   : > { %v897_v40 = vadd.f32 %v896_v38, %v3485_v55  ;;  %v898_v41 = vpop.f32.mrb[10].mxu0  ;;  %1600 = vmatprep.mubr.bf16.mxu0 %v1135_v33  ;;  %v998_v33 = vadd.f32 %v997_v31, %v3549_v45  ;;  %v1000_v38 = vadd.f32 %v999_v34, %v3559_v49  ;;  %v2945_v31 = vld [vmem:[%s3894_s3 + $0x190] ss:$8 sps:$4 sm:$0xff]  }
 0x135   : > { %v899_v43 = vadd.f32 %v898_v41, %v3480_v54  ;;  %v900_v44 = vpop.f32.mrb[11].mxu0  ;;  %1601 = vmatmul.mubr.bf16.gmra.mrb[36].mxu0 %v1134_v30  ;;  %v1082_v56 = vmax.f32 %v895_v37, 0.0  ;;  %v3595_v30 = vpack.c.bf16 %v1073_v23, %v1069_v15  ;;  %v2936_v37 = vld [vmem:[%s3894_s3 + $0x160] ss:$8 sps:$4 sm:$0xff]  }
 0x136   : > { %v901_v47 = vadd.f32 %v900_v44, %v3485_v55  ;;  %1676 = vmatpush1.bf16.msra.mxu0 %v2924_v35  ;;  %v1083_v59 = vmax.f32 %v897_v40, 0.0 }
 0x137   : > { %v1086_v57 = vmax.f32 %v899_v43, 0.0  ;;  %1677 = vmatprep.subr.bf16.mxu0 %v2929_v39  ;;  %v1001_v39 = vpop.f32.mrb[6].mxu1  ;;  %v1076_v43 = vmax.f32 %v998_v33, 0.0 }
 0x138   : > { %v1087_v60 = vmax.f32 %v901_v47, 0.0  ;;  %v1002_v44 = vadd.f32 %v1001_v39, %v3549_v45  ;;  %v1003_v46 = vpop.f32.mrb[7].mxu1 }
 0x139   : > { %v1138_v63 = vpack.c.bf16 %v1086_v57, %v1082_v56  ;;  %v1077_v56 = vmax.f32 %v1000_v38, 0.0  ;;  %v1004_v57 = vadd.f32 %v1003_v46, %v3559_v49  ;;  %v1007_v6 = vpop.f32.mrb[8].mxu1 }
 0x13a   : > { %v1139_v2 = vpack.c.bf16 %v1087_v60, %v1083_v59  ;;  %1678 = vmatpush1.bf16.msra.mxu0 %v2927_v48  ;;  %v904_v3 = vpop.f32.mrb[12].mxu0  ;;  %v1080_v60 = vmax.f32 %v1002_v44, 0.0 }
 0x13b   : > { %v905_v7 = vadd.f32 %v904_v3, %v3480_v54  ;;  %v906_v8 = vpop.f32.mrb[13].mxu0  ;;  %1679 = vmatprep.subr.bf16.mxu0 %v2932_v58 }
 0x13c   : > { %v907_v13 = vadd.f32 %v906_v8, %v3485_v55  ;;  %v908_v14 = vpop.f32.mrb[14].mxu0  ;;  %1610 = vmatprep.mubr.bf16.mxu0 %v1139_v2  ;;  %v3617_v2 = vpack.c.bf16 %v1080_v60, %v1076_v43  ;;  %v1008_v8 = vadd.f32 %v1007_v6, %v3549_v45 }
 0x13d   : > { %v909_v18 = vadd.f32 %v908_v14, %v3480_v54  ;;  %v910_v19 = vpop.f32.mrb[15].mxu0  ;;  %1611 = vmatmul.mubr.bf16.gmra.mrb[40].mxu0 %v1138_v63  ;;  %v1090_v24 = vmax.f32 %v905_v7, 0.0  ;;  %v1081_v63 = vmax.f32 %v1004_v57, 0.0 }
 0x13e   : > { %v911_v21 = vadd.f32 %v910_v19, %v3485_v55  ;;  %1680 = vmatpush1.bf16.msra.mxu0 %v2930_v4  ;;  %v1091_v28 = vmax.f32 %v907_v13, 0.0 }
 0x13f   : > { %v1094_v25 = vmax.f32 %v909_v18, 0.0  ;;  %1681 = vmatprep.subr.bf16.mxu0 %v2935_v9  ;;  %v3619_v5 = vpack.c.bf16 %v1081_v63, %v1077_v56  ;;  %v1009_v9 = vpop.f32.mrb[9].mxu1  ;;  %v1084_v18 = vmax.f32 %v1008_v8, 0.0  ;;  %v2951_v8 = vld [vmem:[%s3894_s3 + $0x1b0] ss:$8 sps:$4 sm:$0xff]  }
 0x140   : > { %v1095_v29 = vmax.f32 %v911_v21, 0.0  ;;  %v1010_v13 = vadd.f32 %v1009_v9, %v3559_v49  ;;  %v1011_v14 = vpop.f32.mrb[10].mxu1 }
 0x141   : > { %v1142_v32 = vpack.c.bf16 %v1094_v25, %v1090_v24  ;;  %v1012_v19 = vadd.f32 %v1011_v14, %v3549_v45  ;;  %v1013_v20 = vpop.f32.mrb[11].mxu1 }
 0x142   : > { %v1143_v35 = vpack.c.bf16 %v1095_v29, %v1091_v28  ;;  %1682 = vmatpush1.bf16.msra.mxu0 %v2933_v22  ;;  %v914_v36 = vpop.f32.mrb[16].mxu0  ;;  %v1085_v23 = vmax.f32 %v1010_v13, 0.0  ;;  %v1014_v24 = vadd.f32 %v1013_v20, %v3559_v49 }
 0x143   : > { %v915_v40 = vadd.f32 %v914_v36, %v3480_v54  ;;  %v916_v41 = vpop.f32.mrb[17].mxu0  ;;  %1683 = vmatprep.subr.bf16.mxu0 %v2938_v26  ;;  %v1088_v28 = vmax.f32 %v1012_v19, 0.0 }
 0x144   : > { %v917_v47 = vadd.f32 %v916_v41, %v3485_v55  ;;  %v918_v48 = vpop.f32.mrb[18].mxu0  ;;  %1620 = vmatprep.mubr.bf16.mxu0 %v1143_v35  ;;  %v2950_v35 = vld [vmem:[%s3894_s3 + $0x1a4] ss:$8 sps:$4 sm:$0xff]  }
 0x145   : > { %v919_v58 = vadd.f32 %v918_v48, %v3480_v54  ;;  %v920_v59 = vpop.f32.mrb[19].mxu0  ;;  %1621 = vmatmul.mubr.bf16.gmra.mrb[44].mxu0 %v1142_v32  ;;  %v1098_v0 = vmax.f32 %v915_v40, 0.0  ;;  %v1089_v32 = vmax.f32 %v1014_v24, 0.0  ;;  %v3641_v36 = vpack.c.bf16 %v1088_v28, %v1084_v18  ;;  %v1017_v40 = vpop.f32.mrb[12].mxu1 }
 0x146   : > { %v921_v61 = vadd.f32 %v920_v59, %v3485_v55  ;;  %1684 = vmatpush1.bf16.msra.mxu0 %v2936_v37  ;;  %v1099_v3 = vmax.f32 %v917_v47, 0.0  ;;  %v1019_v43 = vpop.f32.mrb[13].mxu1  ;;  %v2948_v47 = vld [vmem:[%s3894_s3 + $0x1a0] ss:$8 sps:$4 sm:$0xff]   ;;  %v2953_v59 = vld [vmem:[%s3894_s3 + $0x1b4] ss:$8 sps:$4 sm:$0xff]  }
 0x147   : > { %v1102_v52 = vmax.f32 %v919_v58, 0.0  ;;  %1685 = vmatprep.subr.bf16.mxu0 %v2941_v42  ;;  %v3643_v39 = vpack.c.bf16 %v1089_v32, %v1085_v23  ;;  %v1018_v42 = vadd.f32 %v1017_v40, %v3549_v45  ;;  %v1020_v48 = vadd.f32 %v1019_v43, %v3559_v49  ;;  %v1021_v56 = vpop.f32.mrb[14].mxu1  ;;  %v2954_v23 = vld [vmem:[%s3894_s3 + $0x1c0] ss:$8 sps:$4 sm:$0xff]  }
 0x148   : > { %v1103_v4 = vmax.f32 %v921_v61, 0.0  ;;  %v1022_v61 = vadd.f32 %v1021_v56, %v3549_v45  ;;  %v2962_v56 = vld [vmem:[%s3894_s3 + $0x1e4] ss:$8 sps:$4 sm:$0xff]  }
 0x149   : > { %v1146_v7 = vpack.c.bf16 %v1102_v52, %v1098_v0  ;;  %v1092_v60 = vmax.f32 %v1018_v42, 0.0  ;;  %v1093_v52 = vmax.f32 %v1020_v48, 0.0 }
 0x14a   : > { %v1147_v10 = vpack.c.bf16 %v1103_v4, %v1099_v3  ;;  %1686 = vmatpush1.bf16.msra.mxu0 %v2939_v62  ;;  %v924_v11 = vpop.f32.mrb[20].mxu0  ;;  %v1023_v62 = vpop.f32.mrb[15].mxu1  ;;  %v1096_v6 = vmax.f32 %v1022_v61, 0.0 }
 0x14b   : > { %v925_v15 = vadd.f32 %v924_v11, %v3480_v54  ;;  %v926_v16 = vpop.f32.mrb[21].mxu0  ;;  %1687 = vmatprep.subr.bf16.mxu0 %v2944_v1  ;;  %v1024_v1 = vadd.f32 %v1023_v62, %v3559_v49 }
 0x14c   : > { %v927_v21 = vadd.f32 %v926_v16, %v3485_v55  ;;  %v928_v22 = vpop.f32.mrb[22].mxu0  ;;  %1630 = vmatprep.mubr.bf16.mxu0 %v1147_v10  ;;  %v3665_v13 = vpack.c.bf16 %v1096_v6, %v1092_v60 }
 0x14d   : > { %v929_v25 = vadd.f32 %v928_v22, %v3480_v54  ;;  %v930_v26 = vpop.f32.mrb[23].mxu0  ;;  %1631 = vmatmul.mubr.bf16.gmra.mrb[48].mxu0 %v1146_v7  ;;  %v1106_v33 = vmax.f32 %v925_v15, 0.0  ;;  %v1097_v9 = vmax.f32 %v1024_v1, 0.0 }
 0x14e   : > { %v931_v29 = vadd.f32 %v930_v26, %v3485_v55  ;;  %1688 = vmatpush1.bf16.msra.mxu0 %v2942_v12  ;;  %v1107_v37 = vmax.f32 %v927_v21, 0.0  ;;  %v2956_v12 = vld [vmem:[%s3894_s3 + $0x1c4] ss:$8 sps:$4 sm:$0xff]  }
 0x14f   : > { %v1110_v34 = vmax.f32 %v929_v25, 0.0  ;;  %1689 = vmatprep.subr.bf16.mxu0 %v2947_v17  ;;  %v3667_v16 = vpack.c.bf16 %v1097_v9, %v1093_v52  ;;  %v1027_v17 = vpop.f32.mrb[16].mxu1 }
 0x150   : > { %v1111_v38 = vmax.f32 %v931_v29, 0.0  ;;  %v1028_v19 = vadd.f32 %v1027_v17, %v3549_v45  ;;  %v1029_v20 = vpop.f32.mrb[17].mxu1  ;;  %v2959_v29 = vld [vmem:[%s3894_s3 + $0x1d4] ss:$8 sps:$4 sm:$0xff]  }
 0x151   : > { %v1150_v41 = vpack.c.bf16 %v1110_v34, %v1106_v33  ;;  %v1030_v24 = vadd.f32 %v1029_v20, %v3559_v49  ;;  %v1031_v25 = vpop.f32.mrb[18].mxu1 }
 0x152   : > { %v1151_v44 = vpack.c.bf16 %v1111_v38, %v1107_v37  ;;  %1690 = vmatpush1.bf16.msra.mxu0 %v2945_v31  ;;  %v934_v46 = vpop.f32.mrb[24].mxu0  ;;  %v1100_v31 = vmax.f32 %v1028_v19, 0.0  ;;  %v1032_v32 = vadd.f32 %v1031_v25, %v3549_v45  ;;  %v1033_v33 = vpop.f32.mrb[19].mxu1 }
 0x153   : > { %v935_v57 = vadd.f32 %v934_v46, %v3480_v54  ;;  %v936_v58 = vpop.f32.mrb[25].mxu0  ;;  %1691 = vmatprep.subr.bf16.mxu0 %v2950_v35  ;;  %v1101_v37 = vmax.f32 %v1030_v24, 0.0  ;;  %v1034_v38 = vadd.f32 %v1033_v33, %v3559_v49  ;;  %v1037_v60 = vpop.f32.mrb[20].mxu1 }
 0x154   : > { %v937_v63 = vadd.f32 %v936_v58, %v3485_v55  ;;  %v938_v0 = vpop.f32.mrb[26].mxu0  ;;  %1640 = vmatprep.mubr.bf16.mxu0 %v1151_v44  ;;  %v1104_v42 = vmax.f32 %v1032_v32, 0.0  ;;  %v2957_v44 = vld [vmem:[%s3894_s3 + $0x1d0] ss:$8 sps:$4 sm:$0xff]   ;;  %v1038_v61 = vadd.f32 %v1037_v60, %v3549_v45  ;;  %v1039_v62 = vpop.f32.mrb[21].mxu1 }
 0x155   : > { %v939_v3 = vadd.f32 %v938_v0, %v3480_v54  ;;  %v940_v4 = vpop.f32.mrb[27].mxu0  ;;  %1641 = vmatmul.mubr.bf16.gmra.mrb[52].mxu0 %v1150_v41  ;;  %v1114_v10 = vmax.f32 %v935_v57, 0.0  ;;  %v1105_v46 = vmax.f32 %v1034_v38, 0.0  ;;  %v2960_v0 = vld [vmem:[%s3894_s3 + $0x1e0] ss:$8 sps:$4 sm:$0xff]   ;;  %v1040_v52 = vadd.f32 %v1039_v62, %v3559_v49  ;;  %v1041_v1 = vpop.f32.mrb[22].mxu1 }
 0x156   : > { %v941_v7 = vadd.f32 %v940_v4, %v3485_v55  ;;  %1692 = vmatpush1.bf16.msra.mxu0 %v2948_v47  ;;  %v1115_v14 = vmax.f32 %v937_v63, 0.0  ;;  %v3689_v57 = vpack.c.bf16 %v1104_v42, %v1100_v31  ;;  %v1108_v4 = vmax.f32 %v1038_v61, 0.0 }
 0x157   : > { %v1118_v11 = vmax.f32 %v939_v3, 0.0  ;;  %1693 = vmatprep.subr.bf16.mxu0 %v2953_v59  ;;  %v1149_v59 = vpack.c.bf16 %v1105_v46, %v1101_v37  ;;  %v2965_v3 = vld [vmem:[%s3894_s3 + $0x1f4] ss:$8 sps:$4 sm:$0xff]   ;;  %v1042_v6 = vadd.f32 %v1041_v1, %v3549_v45 }
 0x158   : > { %v1119_v15 = vmax.f32 %v941_v7, 0.0  ;;  %v1043_v7 = vpop.f32.mrb[23].mxu1 }
 0x159   : > { %v1154_v18 = vpack.c.bf16 %v1118_v11, %v1114_v10  ;;  %v1044_v9 = vadd.f32 %v1043_v7, %v3559_v49  ;;  %v1112_v10 = vmax.f32 %v1042_v6, 0.0  ;;  %v2963_v11 = vld [vmem:[%s3894_s3 + $0x1f0] ss:$8 sps:$4 sm:$0xff]   ;;  %v1047_v17 = vpop.f32.mrb[24].mxu1 }
 0x15a   : > { %v1155_v21 = vpack.c.bf16 %v1119_v15, %v1115_v14  ;;  %1694 = vmatpush1.bf16.msra.mxu0 %v2951_v8  ;;  %v944_v22 = vpop.f32.mrb[28].mxu0  ;;  %v1109_v8 = vmax.f32 %v1040_v52, 0.0  ;;  %v1049_v19 = vpop.f32.mrb[25].mxu1  ;;  %v2983_v52 = vld [vmem:[%s3898_s7 + $0x8] sm:$0xff]  }
 0x15b   : > { %v945_v26 = vadd.f32 %v944_v22, %v3480_v54  ;;  %v946_v28 = vpop.f32.mrb[29].mxu0  ;;  %1695 = vmatprep.subr.bf16.mxu0 %v2956_v12  ;;  %v1113_v12 = vmax.f32 %v1044_v9, 0.0  ;;  %v1152_v14 = vpack.c.bf16 %v1112_v10, %v1108_v4  ;;  %v1050_v20 = vadd.f32 %v1049_v19, %v3559_v49  ;;  %v2984_v10 = vld [vmem:[%s3898_s7 + $0x10] sm:$0xff]  }
 0x15c   : > { %v947_v34 = vadd.f32 %v946_v28, %v3485_v55  ;;  %v948_v35 = vpop.f32.mrb[30].mxu0  ;;  %1650 = vmatprep.mubr.bf16.mxu0 %v1155_v21  ;;  %v1051_v21 = vpop.f32.mrb[26].mxu1 }
 0x15d   : > { %v949_v40 = vadd.f32 %v948_v35, %v3480_v54  ;;  %v950_v41 = vpop.f32.mrb[31].mxu0  ;;  %1651 = vmatmul.mubr.bf16.gmra.mrb[56].mxu0 %v1154_v18  ;;  %v1122_v47 = vmax.f32 %v945_v26, 0.0  ;;  %v1153_v15 = vpack.c.bf16 %v1113_v12, %v1109_v8  ;;  %v1048_v18 = vadd.f32 %v1047_v17, %v3549_v45  ;;  %v1053_v24 = vpop.f32.mrb[27].mxu1 }
 0x15e   : > { %v951_v43 = vadd.f32 %v950_v41, %v3485_v55  ;;  %1696 = vmatpush1.bf16.msra.mxu0 %v2954_v23  ;;  %v1123_v54 = vmax.f32 %v947_v34, 0.0  ;;  %v1052_v23 = vadd.f32 %v1051_v21, %v3549_v45  ;;  %v1117_v25 = vmax.f32 %v1050_v20, 0.0  ;;  %v1057_v32 = vpop.f32.mrb[28].mxu1 }
 0x15f   : > { %v1126_v48 = vmax.f32 %v949_v40, 0.0  ;;  %1697 = vmatprep.subr.bf16.mxu0 %v2959_v29  ;;  %v1116_v22 = vmax.f32 %v1048_v18, 0.0  ;;  %v1054_v26 = vadd.f32 %v1053_v24, %v3559_v49  ;;  %v1058_v33 = vadd.f32 %v1057_v32, %v3549_v45  ;;  %v1059_v34 = vpop.f32.mrb[29].mxu1 }
 0x160   : > { %v1127_v58 = vmax.f32 %v951_v43, 0.0  ;;  %v1060_v35 = vadd.f32 %v1059_v34, %v3559_v49  ;;  %v1061_v37 = vpop.f32.mrb[30].mxu1 }
 0x161   : > { %v1158_v55 = vpack.c.bf16 %v1126_v48, %v1122_v47  ;;  %v1121_v28 = vmax.f32 %v1054_v26, 0.0  ;;  %v1124_v38 = vmax.f32 %v1058_v33, 0.0  ;;  %v1062_v40 = vadd.f32 %v1061_v37, %v3549_v45  ;;  %v1063_v41 = vpop.f32.mrb[31].mxu1  ;;  %v2980_v45 = vld [vmem:[%s3896_s5 + $0x78] sm:$0xff]  }
 0x162   : > { %v1159_v63 = vpack.c.bf16 %v1127_v58, %v1123_v54  ;;  %1698 = vmatpush1.bf16.msra.mxu0 %v2957_v44  ;;  %v1125_v42 = vmax.f32 %v1060_v35, 0.0  ;;  %2547 = vmatprep.subr.bf16.mxu1 %v2980_v45 }
 0x163   : > { %1699 = vmatprep.subr.bf16.mxu0 %v2962_v56  ;;  %v1157_v31 = vpack.c.bf16 %v1121_v28, %v1117_v25 }
 0x164   : > { %1660 = vmatprep.mubr.bf16.mxu0 %v1159_v63 }
 0x165   : > { %1661 = vmatmul.mubr.bf16.gmra.mrb[60].mxu0 %v1158_v55 }
 0x166   : > { %1700 = vmatpush1.bf16.msra.mxu0 %v2960_v0  ;;  %1703 = vmatprep.mubr.bf16.mxu0 %v3595_v30  ;;  %v1120_v30 = vmax.f32 %v1052_v23, 0.0 }
 0x167   : > { %1701 = vmatprep.subr.bf16.mxu0 %v2965_v3 }
 0x168   : > { %v1156_v29 = vpack.c.bf16 %v1120_v30, %v1116_v22 }
 0x16a   : > { %1702 = vmatpush1.bf16.msra.mxu0 %v2963_v11 }
 0x16d   : > { %1704 = vmatmul.mubr.bf16.vlgmr.msra.gmra.mrb[32].mxu0 %v3593_v27  ;;  %v1064_v27 = vadd.f32 %v1063_v41, %v3559_v49  ;;  %v2981_v49 = vld [vmem:[%s3896_s5 + $0x38] sm:$0xff]  }
 0x16e   : > { %1713 = vmatprep.mubr.bf16.mxu0 %v3619_v5  ;;  %v1128_v5 = vmax.f32 %v1062_v40, 0.0  ;;  %2548 = vmatpush3.bf16.msra.mxu1 %v2981_v49 }
 0x16f   : > { %v1129_v43 = vmax.f32 %v1064_v27, 0.0 }
 0x170   : > { %v1160_v44 = vpack.c.bf16 %v1128_v5, %v1124_v38 }
 0x171   : > { %v1161_v46 = vpack.c.bf16 %v1129_v43, %v1125_v42 }
 0x175   : > { %1714 = vmatmul.mubr.bf16.gmra.mrb[36].mxu0 %v3617_v2  ;;  %v2982_v2 = vld [vmem:[%s3898_s7] sm:$0xff]  }
 0x176   : > { %1723 = vmatprep.mubr.bf16.mxu0 %v3643_v39  ;;  %2613 = vmatprep.subr.bf16.mxu1 %v2982_v2 }
 0x17d   : > { %1724 = vmatmul.mubr.bf16.gmra.mrb[40].mxu0 %v3641_v36  ;;  %v1226_v36 = vld [vmem:[%s3895_s4] sm:$0x3] }
 0x17e   : > { %1733 = vmatprep.mubr.bf16.mxu0 %v3667_v16  ;;  %v3735_v39 = vrot.slane %v1226_v36, %v422_v51 }
 0x185   : > { %1734 = vmatmul.mubr.bf16.gmra.mrb[44].mxu0 %v3665_v13  ;;  %v3739_v13 = vrot.slane %v1226_v36, %v426_v53 }
 0x186   : > { %1743 = vmatprep.mubr.bf16.mxu0 %v1149_v59 }
 0x18d   : > { %1744 = vmatmul.mubr.bf16.gmra.mrb[48].mxu0 %v3689_v57 }
 0x18e   : > { %1753 = vmatprep.mubr.bf16.mxu0 %v1153_v15 }
 0x195   : > { %1754 = vmatmul.mubr.bf16.gmra.mrb[52].mxu0 %v1152_v14 }
 0x196   : > { %1763 = vmatprep.mubr.bf16.mxu0 %v1157_v31 }
 0x19d   : > { %1764 = vmatmul.mubr.bf16.gmra.mrb[56].mxu0 %v1156_v29 }
 0x19e   : > { %1773 = vmatprep.mubr.bf16.mxu0 %v1161_v46 }
 0x1a5   : > { %1774 = vmatmul.mubr.bf16.gmra.mrb[60].mxu0 %v1160_v44 }
 0x240   : > { %v1705_v16 = vpop.f32.mrb[32].mxu0 }
 0x241   : > { %v2645_v47 = vadd.f32 %v1705_v16, %v3735_v39  ;;  %v1707_v48 = vpop.f32.mrb[33].mxu0 }
 0x242   : > { %v2646_v56 = vadd.f32 %v1707_v48, %v3739_v13  ;;  %v1709_v57 = vpop.f32.mrb[34].mxu0 }
 0x243   : > { %v2647_v54 = vadd.f32 %v1709_v57, %v3735_v39  ;;  %v1711_v58 = vpop.f32.mrb[35].mxu0  ;;  %v1784_v60 = vmax.f32 %v2645_v47, 0.0 }
 0x244   : > { %v2648_v59 = vadd.f32 %v1711_v58, %v3739_v13  ;;  %v1785_v51 = vmax.f32 %v2646_v56, 0.0 }
 0x245   : > { %v1786_v55 = vmax.f32 %v2647_v54, 0.0 }
 0x246   : > { %v1787_v61 = vmax.f32 %v2648_v59, 0.0 }
 0x247   : > { %v1816_v62 = vpack.c.bf16 %v1786_v55, %v1784_v60 }
 0x248   : > { %v1817_v50 = vpack.c.bf16 %v1787_v61, %v1785_v51  ;;  %v1715_v53 = vpop.f32.mrb[36].mxu0 }
 0x249   : > { %v2649_v63 = vadd.f32 %v1715_v53, %v3735_v39  ;;  %v1717_v0 = vpop.f32.mrb[37].mxu0 }
 0x24a   : > { %v2650_v1 = vadd.f32 %v1717_v0, %v3739_v13  ;;  %v1719_v3 = vpop.f32.mrb[38].mxu0  ;;  %1999 = vmatprep.mubr.bf16.mxu1 %v1817_v50 }
 0x24b   : > { %v2651_v4 = vadd.f32 %v1719_v3, %v3735_v39  ;;  %v1721_v6 = vpop.f32.mrb[39].mxu0  ;;  %2000 = vmatmul.mubr.bf16.vlgmr.msra.gmra.mrb[32].mxu1 %v1816_v62  ;;  %v1788_v8 = vmax.f32 %v2649_v63, 0.0 }
 0x24c   : > { %v2652_v7 = vadd.f32 %v1721_v6, %v3739_v13  ;;  %2614 = vmatpush3.bf16.msra.mxu1 %v2982_v2  ;;  %v1789_v11 = vmax.f32 %v2650_v1, 0.0 }
 0x24d   : > { %v1790_v9 = vmax.f32 %v2651_v4, 0.0  ;;  %2615 = vmatprep.subr.bf16.mxu1 %v2983_v52 }
 0x24e   : > { %v1791_v12 = vmax.f32 %v2652_v7, 0.0 }
 0x24f   : > { %v1818_v14 = vpack.c.bf16 %v1790_v9, %v1788_v8 }
 0x250   : > { %v1819_v15 = vpack.c.bf16 %v1791_v12, %v1789_v11  ;;  %v1725_v17 = vpop.f32.mrb[40].mxu0  ;;  %2616 = vmatpush3.bf16.msra.mxu1 %v2983_v52 }
 0x251   : > { %v2653_v18 = vadd.f32 %v1725_v17, %v3735_v39  ;;  %v1727_v19 = vpop.f32.mrb[41].mxu0  ;;  %2617 = vmatprep.subr.bf16.mxu1 %v2984_v10 }
 0x252   : > { %v2654_v20 = vadd.f32 %v1727_v19, %v3739_v13  ;;  %v1729_v21 = vpop.f32.mrb[42].mxu0  ;;  %2007 = vmatprep.mubr.bf16.mxu1 %v1819_v15 }
 0x253   : > { %v2655_v22 = vadd.f32 %v1729_v21, %v3735_v39  ;;  %v1731_v23 = vpop.f32.mrb[43].mxu0  ;;  %2008 = vmatmul.mubr.bf16.gmra.mrb[36].mxu1 %v1818_v14  ;;  %v1792_v25 = vmax.f32 %v2653_v18, 0.0 }
 0x254   : > { %v2656_v24 = vadd.f32 %v1731_v23, %v3739_v13  ;;  %2618 = vmatpush3.bf16.msra.mxu1 %v2984_v10  ;;  %v1793_v30 = vmax.f32 %v2654_v20, 0.0 }
 0x255   : > { %v1794_v26 = vmax.f32 %v2655_v22, 0.0 }
 0x256   : > { %v1795_v28 = vmax.f32 %v2656_v24, 0.0 }
 0x257   : > { %v1820_v29 = vpack.c.bf16 %v1794_v26, %v1792_v25 }
 0x258   : > { %v1821_v31 = vpack.c.bf16 %v1795_v28, %v1793_v30  ;;  %v1735_v32 = vpop.f32.mrb[44].mxu0 }
 0x259   : > { %v2657_v33 = vadd.f32 %v1735_v32, %v3735_v39  ;;  %v1737_v34 = vpop.f32.mrb[45].mxu0 }
 0x25a   : > { %v2658_v35 = vadd.f32 %v1737_v34, %v3739_v13  ;;  %v1739_v37 = vpop.f32.mrb[46].mxu0  ;;  %2015 = vmatprep.mubr.bf16.mxu1 %v1821_v31 }
 0x25b   : > { %v2659_v38 = vadd.f32 %v1739_v37, %v3735_v39  ;;  %v1741_v40 = vpop.f32.mrb[47].mxu0  ;;  %2016 = vmatmul.mubr.bf16.gmra.mrb[40].mxu1 %v1820_v29  ;;  %v1796_v42 = vmax.f32 %v2657_v33, 0.0 }
 0x25c   : > { %v2660_v41 = vadd.f32 %v1741_v40, %v3739_v13  ;;  %v1797_v5 = vmax.f32 %v2658_v35, 0.0 }
 0x25d   : > { %v1798_v27 = vmax.f32 %v2659_v38, 0.0 }
 0x25e   : > { %v1799_v43 = vmax.f32 %v2660_v41, 0.0 }
 0x25f   : > { %v1822_v44 = vpack.c.bf16 %v1798_v27, %v1796_v42  ;;  %v2985_v42 = vld [vmem:[%s3898_s7 + $0x18] sm:$0xff]   ;;  %v2988_v27 = vld [vmem:[%s3898_s7 + $0x30] sm:$0xff]  }
 0x260   : > { %v1823_v46 = vpack.c.bf16 %v1799_v43, %v1797_v5  ;;  %v1745_v45 = vpop.f32.mrb[48].mxu0  ;;  %2619 = vmatprep.subr.bf16.mxu1 %v2985_v42  ;;  %v2989_v5 = vld [vmem:[%s3898_s7 + $0x38] sm:$0xff]  }
 0x261   : > { %v2661_v49 = vadd.f32 %v1745_v45, %v3735_v39  ;;  %v1747_v2 = vpop.f32.mrb[49].mxu0  ;;  %2620 = vmatpush3.bf16.msra.mxu1 %v2985_v42 }
 0x262   : > { %v2662_v36 = vadd.f32 %v1747_v2, %v3739_v13  ;;  %v1749_v16 = vpop.f32.mrb[50].mxu0  ;;  %2023 = vmatprep.mubr.bf16.mxu1 %v1823_v46 }
 0x263   : > { %v2663_v47 = vadd.f32 %v1749_v16, %v3735_v39  ;;  %v1751_v48 = vpop.f32.mrb[51].mxu0  ;;  %2024 = vmatmul.mubr.bf16.gmra.mrb[44].mxu1 %v1822_v44  ;;  %v1800_v57 = vmax.f32 %v2661_v49, 0.0  ;;  %v3797_v44 = vld [vmem:[%s3897_s6] ss:$0 sm:$0xff] }
 0x264   : > { %v2664_v56 = vadd.f32 %v1751_v48, %v3739_v13  ;;  %v1801_v58 = vmax.f32 %v2662_v36, 0.0 }
 0x265   : > { %v1802_v54 = vmax.f32 %v2663_v47, 0.0 }
 0x266   : > { %v1803_v59 = vmax.f32 %v2664_v56, 0.0 }
 0x267   : > { %v1824_v60 = vpack.c.bf16 %v1802_v54, %v1800_v57 }
 0x268   : > { %v1825_v55 = vpack.c.bf16 %v1803_v59, %v1801_v58  ;;  %v1755_v51 = vpop.f32.mrb[52].mxu0 }
 0x269   : > { %v2665_v61 = vadd.f32 %v1755_v51, %v3735_v39  ;;  %v1757_v62 = vpop.f32.mrb[53].mxu0 }
 0x26a   : > { %v2666_v50 = vadd.f32 %v1757_v62, %v3739_v13  ;;  %v1759_v53 = vpop.f32.mrb[54].mxu0  ;;  %2031 = vmatprep.mubr.bf16.mxu1 %v1825_v55 }
 0x26b   : > { %v2667_v63 = vadd.f32 %v1759_v53, %v3735_v39  ;;  %v1761_v0 = vpop.f32.mrb[55].mxu0  ;;  %2032 = vmatmul.mubr.bf16.gmra.mrb[48].mxu1 %v1824_v60  ;;  %v1804_v1 = vmax.f32 %v2665_v61, 0.0 }
 0x26c   : > { %v2668_v52 = vadd.f32 %v1761_v0, %v3739_v13  ;;  %v1805_v4 = vmax.f32 %v2666_v50, 0.0 }
 0x26d   : > { %v1806_v3 = vmax.f32 %v2667_v63, 0.0 }
 0x26e   : > { %v1807_v6 = vmax.f32 %v2668_v52, 0.0 }
 0x26f   : > { %v1826_v7 = vpack.c.bf16 %v1806_v3, %v1804_v1 }
 0x270   : > { %v1827_v8 = vpack.c.bf16 %v1807_v6, %v1805_v4  ;;  %v1765_v9 = vpop.f32.mrb[56].mxu0 }
 0x271   : > { %v2669_v10 = vadd.f32 %v1765_v9, %v3735_v39  ;;  %v1767_v11 = vpop.f32.mrb[57].mxu0 }
 0x272   : > { %v2670_v12 = vadd.f32 %v1767_v11, %v3739_v13  ;;  %v1769_v14 = vpop.f32.mrb[58].mxu0  ;;  %2039 = vmatprep.mubr.bf16.mxu1 %v1827_v8 }
 0x273   : > { %v2671_v15 = vadd.f32 %v1769_v14, %v3735_v39  ;;  %v1771_v17 = vpop.f32.mrb[59].mxu0  ;;  %2040 = vmatmul.mubr.bf16.gmra.mrb[52].mxu1 %v1826_v7  ;;  %v1808_v19 = vmax.f32 %v2669_v10, 0.0 }
 0x274   : > { %v2672_v18 = vadd.f32 %v1771_v17, %v3739_v13  ;;  %v1809_v21 = vmax.f32 %v2670_v12, 0.0 }
 0x275   : > { %v1810_v20 = vmax.f32 %v2671_v15, 0.0 }
 0x276   : > { %v1811_v22 = vmax.f32 %v2672_v18, 0.0 }
 0x277   : > { %v1828_v23 = vpack.c.bf16 %v1810_v20, %v1808_v19 }
 0x278   : > { %v1829_v24 = vpack.c.bf16 %v1811_v22, %v1809_v21  ;;  %v1775_v25 = vpop.f32.mrb[60].mxu0 }
 0x279   : > { %v2673_v26 = vadd.f32 %v1775_v25, %v3735_v39  ;;  %v1777_v30 = vpop.f32.mrb[61].mxu0 }
 0x27a   : > { %v2674_v28 = vadd.f32 %v1777_v30, %v3739_v13  ;;  %v1779_v29 = vpop.f32.mrb[62].mxu0  ;;  %2047 = vmatprep.mubr.bf16.mxu1 %v1829_v24 }
 0x27b   : > { %v2675_v31 = vadd.f32 %v1779_v29, %v3735_v39  ;;  %v1781_v32 = vpop.f32.mrb[63].mxu0  ;;  %2048 = vmatmul.mubr.bf16.gmra.mrb[56].mxu1 %v1828_v23  ;;  %v1812_v34 = vmax.f32 %v2673_v26, 0.0  ;;  %v2986_v39 = vld [vmem:[%s3898_s7 + $0x20] sm:$0xff]  }
 0x27c   : > { %v2676_v33 = vadd.f32 %v1781_v32, %v3739_v13  ;;  %v1813_v37 = vmax.f32 %v2674_v28, 0.0  ;;  %2621 = vmatprep.subr.bf16.mxu1 %v2986_v39  ;;  %v2987_v13 = vld [vmem:[%s3898_s7 + $0x28] sm:$0xff]  }
 0x27d   : > { %v1814_v35 = vmax.f32 %v2675_v31, 0.0  ;;  %2622 = vmatpush3.bf16.msra.mxu1 %v2986_v39 }
 0x27e   : > { %v1815_v38 = vmax.f32 %v2676_v33, 0.0  ;;  %2623 = vmatprep.subr.bf16.mxu1 %v2987_v13 }
 0x27f   : > { %v1830_v40 = vpack.c.bf16 %v1814_v35, %v1812_v34 }
 0x280   : > { %v1831_v41 = vpack.c.bf16 %v1815_v38, %v1813_v37 }
 0x281   : > { %2624 = vmatpush3.bf16.msra.mxu1 %v2987_v13 }
 0x282   : > { %2055 = vmatprep.mubr.bf16.mxu1 %v1831_v41  ;;  %2625 = vmatprep.subr.bf16.mxu1 %v2988_v27 }
 0x283   : > { %2056 = vmatmul.mubr.bf16.gmra.mrb[60].mxu1 %v1830_v40 }
 0x285   : > { %2626 = vmatpush3.bf16.msra.mxu1 %v2988_v27 }
 0x286   : > { %2627 = vmatprep.subr.bf16.mxu1 %v2989_v5 }
 0x289   : > { %2628 = vmatpush3.bf16.msra.mxu1 %v2989_v5 }
 0x31e   : > { %v2549_v43 = vpop.f32.mrb[32].mxu1 }
 0x31f   : > { %v2550_v46 = vpop.f32.mrb[33].mxu1 }
 0x320   : > { %v2551_v45 = vadd.f32 %v2550_v46, %v2549_v43  ;;  %v2552_v49 = vpop.f32.mrb[34].mxu1 }
 0x321   : > { %v2553_v2 = vpop.f32.mrb[35].mxu1 }
 0x322   : > { %v2002_v36 = vadd.f32 %v2551_v45, %v3797_v44  ;;  %v2554_v16 = vadd.f32 %v2553_v2, %v2552_v49 }
 0x324   : > { %v2005_v47 = vadd.f32 %v2554_v16, %v3797_v44  ;;  %v2064_v48 = vmax.f32 %v2002_v36, 0.0 }
 0x326   : > { %v2065_v56 = vmax.f32 %v2005_v47, 0.0  ;;  %v2555_v57 = vpop.f32.mrb[36].mxu1 }
 0x327   : > { %v2556_v54 = vpop.f32.mrb[37].mxu1 }
 0x328   : > { %v2557_v58 = vadd.f32 %v2556_v54, %v2555_v57  ;;  %v2558_v59 = vpop.f32.mrb[38].mxu1  ;;  %v2080_v60 = vpack.c.bf16 %v2065_v56, %v2064_v48 }
 0x329   : > { %v2559_v55 = vpop.f32.mrb[39].mxu1 }
 0x32a   : > { %v2010_v51 = vadd.f32 %v2557_v58, %v3797_v44  ;;  %v2560_v61 = vadd.f32 %v2559_v55, %v2558_v59  ;;  %2629 = vmatprep.mubr.bf16.mxu1 %v2080_v60 }
 0x32c   : > { %v2013_v62 = vadd.f32 %v2560_v61, %v3797_v44  ;;  %v2066_v50 = vmax.f32 %v2010_v51, 0.0 }
 0x32e   : > { %v2067_v53 = vmax.f32 %v2013_v62, 0.0  ;;  %v2561_v63 = vpop.f32.mrb[40].mxu1 }
 0x32f   : > { %v2562_v0 = vpop.f32.mrb[41].mxu1 }
 0x330   : > { %v2081_v52 = vpack.c.bf16 %v2067_v53, %v2066_v50  ;;  %v2563_v1 = vadd.f32 %v2562_v0, %v2561_v63  ;;  %v2564_v3 = vpop.f32.mrb[42].mxu1 }
 0x331   : > { %v2565_v4 = vpop.f32.mrb[43].mxu1 }
 0x332   : > { %v2018_v6 = vadd.f32 %v2563_v1, %v3797_v44  ;;  %v2566_v7 = vadd.f32 %v2565_v4, %v2564_v3  ;;  %2630 = vmatmul.mubr.bf16.vlgmr.msra.gmra.mrb[64].mxu1 %v2081_v52  ;;  %v2517_v3 = vld [vmem:[%s3899_s8] ss:$0 sm:$0xff] }
 0x334   : > { %v2021_v8 = vadd.f32 %v2566_v7, %v3797_v44  ;;  %v2068_v9 = vmax.f32 %v2018_v6, 0.0 }
 0x336   : > { %v2069_v10 = vmax.f32 %v2021_v8, 0.0  ;;  %v2567_v11 = vpop.f32.mrb[44].mxu1 }
 0x337   : > { %v2568_v12 = vpop.f32.mrb[45].mxu1 }
 0x338   : > { %v2569_v14 = vadd.f32 %v2568_v12, %v2567_v11  ;;  %v2570_v15 = vpop.f32.mrb[46].mxu1  ;;  %v2082_v17 = vpack.c.bf16 %v2069_v10, %v2068_v9 }
 0x339   : > { %v2571_v18 = vpop.f32.mrb[47].mxu1 }
 0x33a   : > { %v2026_v19 = vadd.f32 %v2569_v14, %v3797_v44  ;;  %v2572_v20 = vadd.f32 %v2571_v18, %v2570_v15  ;;  %2633 = vmatprep.mubr.bf16.mxu1 %v2082_v17 }
 0x33c   : > { %v2029_v21 = vadd.f32 %v2572_v20, %v3797_v44  ;;  %v2070_v22 = vmax.f32 %v2026_v19, 0.0 }
 0x33e   : > { %v2071_v23 = vmax.f32 %v2029_v21, 0.0  ;;  %v2573_v24 = vpop.f32.mrb[48].mxu1 }
 0x33f   : > { %v2574_v25 = vpop.f32.mrb[49].mxu1 }
 0x340   : > { %v2575_v26 = vadd.f32 %v2574_v25, %v2573_v24  ;;  %v2576_v30 = vpop.f32.mrb[50].mxu1  ;;  %v2083_v28 = vpack.c.bf16 %v2071_v23, %v2070_v22 }
 0x341   : > { %v2577_v29 = vpop.f32.mrb[51].mxu1 }
 0x342   : > { %v2034_v31 = vadd.f32 %v2575_v26, %v3797_v44  ;;  %v2578_v32 = vadd.f32 %v2577_v29, %v2576_v30  ;;  %2634 = vmatmul.mubr.bf16.gmra.mrb[68].mxu1 %v2083_v28 }
 0x344   : > { %v2037_v33 = vadd.f32 %v2578_v32, %v3797_v44  ;;  %v2072_v34 = vmax.f32 %v2034_v31, 0.0 }
 0x346   : > { %v2073_v35 = vmax.f32 %v2037_v33, 0.0  ;;  %v2579_v37 = vpop.f32.mrb[52].mxu1 }
 0x347   : > { %v2580_v38 = vpop.f32.mrb[53].mxu1 }
 0x348   : > { %v2581_v40 = vadd.f32 %v2580_v38, %v2579_v37  ;;  %v2582_v41 = vpop.f32.mrb[54].mxu1  ;;  %v2084_v42 = vpack.c.bf16 %v2073_v35, %v2072_v34 }
 0x349   : > { %v2583_v39 = vpop.f32.mrb[55].mxu1 }
 0x34a   : > { %v2042_v13 = vadd.f32 %v2581_v40, %v3797_v44  ;;  %v2584_v27 = vadd.f32 %v2583_v39, %v2582_v41  ;;  %2637 = vmatprep.mubr.bf16.mxu1 %v2084_v42 }
 0x34c   : > { %v2045_v5 = vadd.f32 %v2584_v27, %v3797_v44  ;;  %v2074_v43 = vmax.f32 %v2042_v13, 0.0 }
 0x34e   : > { %v2075_v46 = vmax.f32 %v2045_v5, 0.0  ;;  %v2585_v45 = vpop.f32.mrb[56].mxu1 }
 0x34f   : > { %v2586_v49 = vpop.f32.mrb[57].mxu1 }
 0x350   : > { %v2587_v2 = vadd.f32 %v2586_v49, %v2585_v45  ;;  %v2588_v36 = vpop.f32.mrb[58].mxu1  ;;  %v2085_v16 = vpack.c.bf16 %v2075_v46, %v2074_v43 }
 0x351   : > { %v2589_v47 = vpop.f32.mrb[59].mxu1 }
 0x352   : > { %v2050_v48 = vadd.f32 %v2587_v2, %v3797_v44  ;;  %v2590_v56 = vadd.f32 %v2589_v47, %v2588_v36  ;;  %2638 = vmatmul.mubr.bf16.gmra.mrb[72].mxu1 %v2085_v16 }
 0x354   : > { %v2053_v57 = vadd.f32 %v2590_v56, %v3797_v44  ;;  %v2076_v54 = vmax.f32 %v2050_v48, 0.0 }
 0x356   : > { %v2077_v58 = vmax.f32 %v2053_v57, 0.0  ;;  %v2591_v59 = vpop.f32.mrb[60].mxu1 }
 0x357   : > { %v2592_v60 = vpop.f32.mrb[61].mxu1 }
 0x358   : > { %v2593_v55 = vadd.f32 %v2592_v60, %v2591_v59  ;;  %v2594_v51 = vpop.f32.mrb[62].mxu1  ;;  %v2086_v61 = vpack.c.bf16 %v2077_v58, %v2076_v54 }
 0x359   : > { %v2595_v62 = vpop.f32.mrb[63].mxu1 }
 0x35a   : > { %v2058_v50 = vadd.f32 %v2593_v55, %v3797_v44  ;;  %v2596_v53 = vadd.f32 %v2595_v62, %v2594_v51  ;;  %2641 = vmatprep.mubr.bf16.mxu1 %v2086_v61 }
 0x35c   : > { %v2061_v63 = vadd.f32 %v2596_v53, %v3797_v44  ;;  %v2078_v0 = vmax.f32 %v2058_v50, 0.0 }
 0x35e   : > { %v2079_v52 = vmax.f32 %v2061_v63, 0.0 }
 0x360   : > { %v2087_v1 = vpack.c.bf16 %v2079_v52, %v2078_v0 }
 0x362   : > { %2642 = vmatmul.mubr.bf16.gmra.mrb[76].mxu1 %v2087_v1 }
 0x405   : > { %v2631_v4 = vpop.f32.mrb[64].mxu1 }
 0x406   : > { %v2202_v6 = vadd.f32 %v2631_v4, %v2517_v3  ;;  %v2193_v7 = vpop.f32.mrb[65].mxu1 }
 0x407   : > { %v2194_v8 = vadd.f32 %v2517_v3, %v2193_v7  ;;  %v2632_v9 = vpop.f32.mrb[66].mxu1 }
 0x408   : > { %2258 = vst [vmem:[%s3821_s16 + $0x10] sm:$0xff] %v2202_v6  ;;  %v2205_v44 = vadd.f32 %v2632_v9, %v2517_v3  ;;  %v2196_v10 = vpop.f32.mrb[67].mxu1 }
 0x409   : > { %2256 = vst [vmem:[%s3821_s16] sm:$0xff] %v2194_v8  ;;  %v2197_v11 = vadd.f32 %v2517_v3, %v2196_v10 }
 0x40a   : > { %2259 = vst [vmem:[%s3821_s16 + $0x18] sm:$0xff] %v2205_v44 }
 0x40b   : > { %2257 = vst [vmem:[%s3821_s16 + $0x8] sm:$0xff] %v2197_v11 }
 0x415   : > { %v2635_v12 = vpop.f32.mrb[68].mxu1 }
 0x416   : > { %v2218_v14 = vadd.f32 %v2635_v12, %v2517_v3  ;;  %v2209_v15 = vpop.f32.mrb[69].mxu1 }
 0x417   : > { %v2210_v17 = vadd.f32 %v2517_v3, %v2209_v15  ;;  %v2636_v18 = vpop.f32.mrb[70].mxu1 }
 0x418   : > { %2262 = vst [vmem:[%s3821_s16 + $0x30] sm:$0xff] %v2218_v14  ;;  %v2221_v19 = vadd.f32 %v2636_v18, %v2517_v3  ;;  %v2212_v20 = vpop.f32.mrb[71].mxu1 }
 0x419   : > { %2260 = vst [vmem:[%s3821_s16 + $0x20] sm:$0xff] %v2210_v17  ;;  %v2213_v21 = vadd.f32 %v2517_v3, %v2212_v20 }
 0x41a   : > { %2263 = vst [vmem:[%s3821_s16 + $0x38] sm:$0xff] %v2221_v19 }
 0x41b   : > { %2261 = vst [vmem:[%s3821_s16 + $0x28] sm:$0xff] %v2213_v21 }
 0x425   : > { %v2639_v22 = vpop.f32.mrb[72].mxu1 }
 0x426   : > { %v2234_v23 = vadd.f32 %v2639_v22, %v2517_v3  ;;  %v2225_v24 = vpop.f32.mrb[73].mxu1 }
 0x427   : > { %v2226_v25 = vadd.f32 %v2517_v3, %v2225_v24  ;;  %v2640_v26 = vpop.f32.mrb[74].mxu1 }
 0x428   : > { %2266 = vst [vmem:[%s3821_s16 + $0x50] sm:$0xff] %v2234_v23  ;;  %v2237_v30 = vadd.f32 %v2640_v26, %v2517_v3  ;;  %v2228_v28 = vpop.f32.mrb[75].mxu1 }
 0x429   : > { %2264 = vst [vmem:[%s3821_s16 + $0x40] sm:$0xff] %v2226_v25  ;;  %v2229_v29 = vadd.f32 %v2517_v3, %v2228_v28 }
 0x42a   : > { %2267 = vst [vmem:[%s3821_s16 + $0x58] sm:$0xff] %v2237_v30 }
 0x42b   : > { %2265 = vst [vmem:[%s3821_s16 + $0x48] sm:$0xff] %v2229_v29 }
 0x435   : > { %v2643_v31 = vpop.f32.mrb[76].mxu1 }
 0x436   : > { %v2250_v32 = vadd.f32 %v2643_v31, %v2517_v3  ;;  %v2241_v33 = vpop.f32.mrb[77].mxu1 }
 0x437   : > { %v2242_v34 = vadd.f32 %v2517_v3, %v2241_v33  ;;  %v2644_v35 = vpop.f32.mrb[78].mxu1 }
 0x438   : > { %2270 = vst [vmem:[%s3821_s16 + $0x70] sm:$0xff] %v2250_v32  ;;  %v2253_v37 = vadd.f32 %v2644_v35, %v2517_v3  ;;  %v2244_v38 = vpop.f32.mrb[79].mxu1 }
 0x439   : > { %2268 = vst [vmem:[%s3821_s16 + $0x60] sm:$0xff] %v2242_v34  ;;  %v2245_v40 = vadd.f32 %v2517_v3, %v2244_v38 }
 0x43a   : > { %2271 = vst [vmem:[%s3821_s16 + $0x78] sm:$0xff] %v2253_v37 }
 0x43b   : > { %2269 = vst [vmem:[%s3821_s16 + $0x68] sm:$0xff] %v2245_v40 }
 0x43c   : > { %3003 = shalt.err (!%p3000_p3)
}
 0x43d   : > { %s3004_s25 = scalar_lea.hbm %s3841_s23, 2048  ;;  %s3008_s16 = scalar_lea.hbm %s3900_s9, 4096 }
 0x43e   : > { %p3005_p4 = scmp.ne.s32.totalorder %s3841_s23, %s3004_s25  ;;  %p3009_p9 = scmp.lt.u32.totalorder %s3841_s23, %s3900_s9 }
 0x43f   : > { %p3010_p10 = scmp.lt.u32.totalorder %s3008_s16, %s3004_s25  ;;  %p3012_p12 = scmp.lt.u32.totalorder %s3004_s25, %s3841_s23 }
 0x440   : > { %p3006_p7 = pnand %p3005_p4, %p3145_p5 }
 0x441   : > { %p3011_p11 = por %p3010_p10, %p3009_p9 }
 0x442   : > { %p3007_p8 = pneg %p3006_p7 }
 0x443   : > { %p3013_p13 = por %p3012_p12, %p3011_p11 }
 0x445   : > { %p3014_p0 = pnand %p3013_p13, %p3007_p8 }
 0x447   : > { %3017 = shalt.err (!%p3014_p0)
}
 0x448   : > { %s3055_s28 = smov 128   ;;  %s3056_s24 = smov 8  }
 0x449   : > { %2709 = dma.vmem_to_hbm [thread:$0]  (%p3145_p5), %s3843_s17, 2048, %s3841_s23, %s3850_s13, %s3055_s28, %s3055_s28, %s3056_s24  }
 0x44a PF: > { %p2715_p1 = scmp.ge.s32.totalorder %s3052_s12, 2  ;;  %s2301_s21 = sand.u32 1, %s3040_s30  }
 0x44b   : > { %s2302_s18 = scalar_lea.sflag [#allocation3], %s2301_s21 }
 0x44c   : > { %p2712_p2 = pnand %p2715_p1, %p3149_p6 }
 0x44e   : > { %3035 = dma.done.wait (!%p2712_p2), %s2302_s18, 2048  }
 0x44f   : > { %3037 = vsyncadd (!%p2712_p2), %s2302_s18, 4294965248  ;;  %s3904_s26 = sld [smem:[#allocation5_spill]]  ;;  %p19_p3 = scmp.ge.s32.totalorder %s3132_s15, 4  }
 0x450   : > { %s3905_s30 = smov %s3044_s10  ;;  %s3906_s10 = smov %s3048_s11 }
 0x451   : > { %s3908_s12 = smov %s3132_s15  ;;  %21 = sbr.rel (!%p19_p3) target bundleno = 3 (0x3), region = 91 }
 0x455   : > { %s3907_s11 = smov %s3904_s26 }
 0x458   :  { %2307 = vsyncpa [#allocation3], 1 }
 0x459   :  { %2309 = vsyncpa [#allocation3 + $0x1], 1 }

</bundles_post_ra>
